<compile_context>
chip_gen: v6e
topology: v6e:2x2x1
jax: 0.10.0
libtpu: 0.0.40
codegen_flags: <defaults>
</compile_context>

<pallas_src>
import math

import jax
import jax.numpy as jnp
from jax.experimental import pallas as pl
from jax.experimental.pallas import tpu as pltpu

_BN_EPS = 1e-5   # PyTorch BatchNorm2d default


# ------------------------------ fused kernel -------------------------------

def _make_fused_kernel(*, w, nh, args, args2, row_tile, epi_tile,
                       nsteps_stream, compute_dtype):
    """Builds the fused AMLP forward kernel (closure over static config)."""
    num_layers = len(args) - 1
    num_dc = len(args2) - 1
    c0 = args[0]

    col_offs, off = [], 0
    for c in args[1:]:
        col_offs.append(off)
        off += c

    def kernel(*refs):
        # ---- unpack refs (inputs, then output, then VMEM scratch) ----
        idx = 0
        x_ref = refs[idx]; idx += 1                                   # (w, row_tile, c0)
        layer_refs = [(refs[idx + 2 * k], refs[idx + 2 * k + 1])
                      for k in range(num_layers)]
        idx += 2 * num_layers
        lab_refs = [(refs[idx + 3 * k], refs[idx + 3 * k + 1], refs[idx + 3 * k + 2])
                    for k in range(num_layers)]
        idx += 3 * num_layers
        dc_refs = [(refs[idx + 2 * k], refs[idx + 2 * k + 1])
                   for k in range(num_dc)]
        idx += 2 * num_dc
        out_ref = refs[idx]; idx += 1                                 # (epi_tile, cf)
        feat_ref = refs[idx]; idx += 1                                # (nh, sum_c)
        bn_refs = [(refs[idx + 2 * k], refs[idx + 2 * k + 1])        # (1, c//4) x2
                   for k in range(num_layers)]

        i = pl.program_id(0)

        @pl.when(i == 0)
        def _init_bn():
            for (s_ref, q_ref) in bn_refs:
                s_ref[...] = jnp.zeros_like(s_ref)
                q_ref[...] = jnp.zeros_like(q_ref)

        # ---- phase 1: streamed conv chain + W max-pool + BN partial sums ----
        @pl.when(i < nsteps_stream)
        def _stream():
            row0 = i * row_tile
            if row_tile % 8 == 0:
                row0 = pl.multiple_of(row0, 8)
            # (w, row_tile, c0) -> (w*row_tile, c0): leading-dim collapse only.
            cur = x_ref[...].reshape(w * row_tile, c0)
            for li, (wm_ref, b_ref) in enumerate(layer_refs):
                c_out = args[li + 1]
                z = jnp.dot(cur, wm_ref[...], preferred_element_type=jnp.float32)
                act = jnp.maximum(z + b_ref[...], 0.0)
                # F.max_pool2d(kernel=[1, W]) == elementwise max over W slices.
                pooled = jnp.max(act.reshape(w, row_tile, c_out), axis=0)
                pooled_c = pooled.astype(compute_dtype)
                feat_ref[pl.ds(row0, row_tile), pl.ds(col_offs[li], c_out)] = pooled_c
                # BatchNorm sufficient statistics for the lab branch:
                # z1 = feat @ W1 (same values recomputed in phase 2).
                w1_ref = lab_refs[li][0]
                z1 = jnp.dot(pooled_c, w1_ref[...],
                             preferred_element_type=jnp.float32)
                s_ref, q_ref = bn_refs[li]
                s_ref[...] += jnp.sum(z1, axis=0, keepdims=True)
                q_ref[...] += jnp.sum(z1 * z1, axis=0, keepdims=True)
                cur = act.astype(compute_dtype)

        # ---- phase 2: row-tiled gating + dc SharedMLP + lane-dense store ----
        @pl.when(i >= nsteps_stream)
        def _epilogue():
            j = i - nsteps_stream
            row0 = j * epi_tile
            if epi_tile % 8 == 0:
                row0 = pl.multiple_of(row0, 8)
            feat_tile = feat_ref[pl.ds(row0, epi_tile), :]            # (epi_tile, sum_c)
            for li in range(num_layers):
                c = args[li + 1]
                w1_ref, w2_ref, b2_ref = lab_refs[li]
                s_ref, q_ref = bn_refs[li]
                feat_li = feat_tile[:, col_offs[li]:col_offs[li] + c]
                # Conv2d(c, c//4, bn=True): conv (no bias) -> BatchNorm2d
                # (full-batch train-mode stats, gamma=1, beta=0) -> ReLU.
                z1 = jnp.dot(feat_li, w1_ref[...],
                             preferred_element_type=jnp.float32)
                mean = s_ref[...] * (1.0 / nh)
                var = jnp.maximum(q_ref[...] * (1.0 / nh) - mean * mean, 0.0)
                inv_std = jax.lax.rsqrt(var + _BN_EPS)
                z1n = jnp.maximum((z1 - mean) * inv_std, 0.0)
                # Conv2d(c//4, c, bn=False, activation=None): conv + bias.
                z2 = jnp.dot(z1n.astype(compute_dtype), w2_ref[...],
                             preferred_element_type=jnp.float32) + b2_ref[...]
                gate = 1.0 / (1.0 + jnp.exp(-z2))                     # exact sigmoid
                gated = feat_li.astype(jnp.float32) * (1.0 + gate)    # feat + lab*feat
                # Overwrite the feat scratch in place -> contiguous gated matrix,
                # so the first dc conv is a single K = sum(C) matmul (no concat).
                feat_ref[pl.ds(row0, epi_tile), pl.ds(col_offs[li], c)] = (
                    gated.astype(compute_dtype))
            y_in = feat_ref[pl.ds(row0, epi_tile), :]
            y = None
            for (wd_ref, bd_ref) in dc_refs:                          # dc SharedMLP
                cur_in = y_in if y is None else y.astype(compute_dtype)
                y = jnp.maximum(
                    jnp.dot(cur_in, wd_ref[...],
                            preferred_element_type=jnp.float32) + bd_ref[...], 0.0)
            out_ref[...] = y.astype(out_ref.dtype)                    # (epi_tile, cf)

    return kernel


# ------------------------------ forward wrapper -----------------------------

def _pick_tile(total, row_bytes, target_bytes):
    """Largest multiple-of-8 divisor of `total` keeping a block under target."""
    if total % 8 != 0:
        return total                    # full-dim block (exempt from the 8-rule)
    cap = max(8, target_bytes // max(1, row_bytes))
    best, t, lim = 8, 8, min(total, cap)
    while t <= lim:
        if total % t == 0:
            best = t
        t += 8
    return best


def amlp_forward(x_nchw, params, *, row_tile=None, epi_tile=None,
                 compute_dtype=jnp.bfloat16,
                 vmem_limit_bytes=48 * 1024 * 1024):
    """AMLP forward.  x_nchw: (N, C, H, W) -> (N, args2[-1], H, 1) (NCHW).

    vmem_limit_bytes default is v7x-safe (64 MiB physical); raise toward
    ~100 MiB on v5e/v6e for very large N*H.
    """
    n, c0, h, w = x_nchw.shape
    nh = n * h

    layer_ws, lab_ws, dc_ws = params["layers"], params["lab"], params["dc"]
    num_layers = len(layer_ws)
    assert len(lab_ws) == num_layers and len(dc_ws) >= 1

    args = [c0] + [wk.shape[1] for (wk, _) in layer_ws]
    args2 = [dc_ws[0][0].shape[0]] + [wk.shape[1] for (wk, _) in dc_ws]
    assert args2[0] == sum(args[1:]), "dc input width must equal concat width"
    cf = args2[-1]
    sum_c = sum(args[1:])

    itemsize = jnp.dtype(compute_dtype).itemsize
    if row_tile is None:
        # ~4 MiB streamed blocks (512+ sublanes ~ 85% of HBM roofline).
        row_tile = _pick_tile(nh, w * max(args) * itemsize, 4 * 1024 * 1024)
    if epi_tile is None:
        # Bound the epilogue's live f32 temporaries to a couple of MiB.
        epi_tile = _pick_tile(nh, (sum_c + sum(args2)) * 4 * 4, 2 * 1024 * 1024)
    assert nh % row_tile == 0 and (row_tile % 8 == 0 or row_tile == nh), row_tile
    assert nh % epi_tile == 0 and (epi_tile % 8 == 0 or epi_tile == nh), epi_tile

    nsteps_stream = nh // row_tile
    nsteps_epi = nh // epi_tile

    # Layout: NCHW -> (W, N*H, C); W leads so the per-layer W max-pool is pure
    # elementwise max over lane-aligned (row_tile, C) tiles inside the kernel.
    # TODO(synk): accept channel-last input (or fold this permute into the x
    #   BlockSpec) so this wrapper-side full-tensor HBM transpose disappears.
    x_rows = (jnp.transpose(x_nchw, (3, 0, 2, 1))
              .reshape(w, nh, c0).astype(compute_dtype))

    inputs = [x_rows]
    in_specs = [pl.BlockSpec(
        (w, row_tile, c0),
        lambda i: (0, jnp.minimum(i, nsteps_stream - 1), 0))]

    def _resident(arr):
        # Whole-array block with a constant index map: fetched once, stays
        # VMEM-resident for the whole grid (weights / biases are small).
        # TODO(synk): single-buffer these (pl.Buffered(1) / VMEM memory_space)
        #   to halve their VMEM footprint -- matters for big dc weights on v7x.
        inputs.append(arr)
        in_specs.append(pl.BlockSpec(arr.shape, lambda i, nd=arr.ndim: (0,) * nd))

    for (wk, bk) in layer_ws:
        _resident(wk.astype(compute_dtype))
        _resident(bk.reshape(1, -1).astype(jnp.float32))
    for (w1, w2, b2) in lab_ws:
        _resident(w1.astype(compute_dtype))
        _resident(w2.astype(compute_dtype))
        _resident(b2.reshape(1, -1).astype(jnp.float32))
    for (wk, bk) in dc_ws:
        _resident(wk.astype(compute_dtype))
        _resident(bk.reshape(1, -1).astype(jnp.float32))

    kernel = _make_fused_kernel(
        w=w, nh=nh, args=args, args2=args2, row_tile=row_tile, epi_tile=epi_tile,
        nsteps_stream=nsteps_stream, compute_dtype=compute_dtype)

    scratch_shapes = [pltpu.VMEM((nh, sum_c), compute_dtype)]   # pooled feats
    for c in args[1:]:                                          # BN sum / sumsq
        c4 = c // 4
        scratch_shapes += [pltpu.VMEM((1, c4), jnp.float32),
                           pltpu.VMEM((1, c4), jnp.float32)]

    out = pl.pallas_call(
        kernel,
        out_shape=jax.ShapeDtypeStruct((nh, cf), x_nchw.dtype),
        grid_spec=pltpu.PrefetchScalarGridSpec(
            num_scalar_prefetch=0,
            grid=(nsteps_stream + nsteps_epi,),
            in_specs=in_specs,
            out_specs=pl.BlockSpec(
                (epi_tile, cf),
                lambda i: (jnp.maximum(i - nsteps_stream, 0), 0)),
            scratch_shapes=scratch_shapes,
        ),
        compiler_params=pltpu.CompilerParams(
            # Single sequential axis: phase 1 fills the feat scratch + BN sums,
            # phase 2 consumes them row-block by row-block.
            # TODO(synk): v7x megacore sharding (see header).
            dimension_semantics=("arbitrary",),
            vmem_limit_bytes=vmem_limit_bytes,
        ),
    )(*inputs)

    # Tiny pooled output: (N*H, cf) -> NCHW (N, cf, H, 1) outside the kernel.
    return jnp.transpose(out.reshape(n, h, cf), (0, 2, 1))[..., None]


# -------------------------- parameters & reference --------------------------

def init_amlp_params(key, args, args2):
    """Deterministic synthetic params: kaiming_normal_ conv weights (stored as
    (Cin, Cout)), zero biases (as in the PyTorch module's init)."""
    params = {"layers": [], "lab": [], "dc": []}

    def kaiming(k, cin, cout):
        return jax.random.normal(k, (cin, cout), jnp.float32) * math.sqrt(2.0 / cin)

    keys = jax.random.split(key, 3)

    ks = jax.random.split(keys[0], len(args) - 1)
    for i in range(len(args) - 1):
        params["layers"].append(
            (kaiming(ks[i], args[i], args[i + 1]),
             jnp.zeros((args[i + 1],), jnp.float32)))

    ks = jax.random.split(keys[1], 2 * len(args[1:]))
    for i, c in enumerate(args[1:]):
        c4 = c // 4
        w1 = kaiming(ks[2 * i], c, c4)          # bn=True -> no conv bias
        w2 = kaiming(ks[2 * i + 1], c4, c)
        params["lab"].append((w1, w2, jnp.zeros((c,), jnp.float32)))

    ks = jax.random.split(keys[2], len(args2) - 1)
    for i in range(len(args2) - 1):
        params["dc"].append(
            (kaiming(ks[i], args2[i], args2[i + 1]),
             jnp.zeros((args2[i + 1],), jnp.float32)))

    return params


def amlp_reference(x_nchw, params):
    """Pure-JAX f32 reference mirroring the PyTorch forward (sanity check)."""
    n, c0, h, w = x_nchw.shape
    cur = jnp.transpose(x_nchw, (0, 2, 3, 1)).reshape(n * h * w, c0)
    feats = []
    for (wk, bk) in params["layers"]:
        cur = jnp.maximum(cur @ wk + bk, 0.0)
        feats.append(jnp.max(cur.reshape(n * h, w, -1), axis=1))
    gated = []
    for feat, (w1, w2, b2) in zip(feats, params["lab"]):
        z1 = feat @ w1
        mean = z1.mean(axis=0, keepdims=True)
        var = ((z1 - mean) ** 2).mean(axis=0, keepdims=True)
        z1 = jnp.maximum((z1 - mean) / jnp.sqrt(var + _BN_EPS), 0.0)
        s = jax.nn.sigmoid(z1 @ w2 + b2)
        gated.append(feat * (1.0 + s))
    y = jnp.concatenate(gated, axis=-1)
    for (wk, bk) in params["dc"]:
        y = jnp.maximum(y @ wk + bk, 0.0)
    return jnp.transpose(y.reshape(n, h, -1), (0, 2, 1))[..., None]


# --------------------------------- driver -----------------------------------

if __name__ == "__main__":
    key = jax.random.PRNGKey(0)
    k_x, k_p = jax.random.split(key)

    args = [4, 8, 16]            # main MLP channel widths
    args2 = [8 + 16, 16]         # dc MLP; args2[0] == sum(args[1:])

    N, C, H, W = 2, args[0], 8, 16
    x = jax.random.normal(k_x, (N, C, H, W), jnp.float32)   # NCHW like PyTorch

    params = init_amlp_params(k_p, args, args2)

    fwd = jax.jit(amlp_forward,
                  static_argnames=("row_tile", "epi_tile", "compute_dtype",
                                   "vmem_limit_bytes"))
    # row_tile=8 / epi_tile=8 -> 2 streamed steps + 2 epilogue steps (exercises
    # both pipelined phases at this small size).
    out = jax.block_until_ready(fwd(x, params, row_tile=8, epi_tile=8))
    assert out.shape == (N, args2[-1], H, 1), out.shape

    # Numerical sanity check vs. pure-JAX f32 reference (bf16 storage + MXU
    # default precision inside the kernel -> loose-ish tolerance).
    ref = amlp_reference(x, params)
    denom = float(jnp.maximum(jnp.max(jnp.abs(ref)), 1.0))
    rel_err = float(jnp.max(jnp.abs(out - ref))) / denom
    assert rel_err < 5e-2, f"kernel/reference mismatch: rel_err={rel_err:.4f}"

    print("KERNEL_OK")
</pallas_src>

<mosaic_0001>
module attributes {stable_mosaic.version = 11 : i64} {
  func.func @kernel(%arg0: i32, %arg1: memref<16x8x4xbf16, #tpu.memory_space<vmem>>, %arg2: memref<4x8xbf16, #tpu.memory_space<vmem>>, %arg3: memref<1x8xf32, #tpu.memory_space<vmem>>, %arg4: memref<8x16xbf16, #tpu.memory_space<vmem>>, %arg5: memref<1x16xf32, #tpu.memory_space<vmem>>, %arg6: memref<8x2xbf16, #tpu.memory_space<vmem>>, %arg7: memref<2x8xbf16, #tpu.memory_space<vmem>>, %arg8: memref<1x8xf32, #tpu.memory_space<vmem>>, %arg9: memref<16x4xbf16, #tpu.memory_space<vmem>>, %arg10: memref<4x16xbf16, #tpu.memory_space<vmem>>, %arg11: memref<1x16xf32, #tpu.memory_space<vmem>>, %arg12: memref<24x16xbf16, #tpu.memory_space<vmem>>, %arg13: memref<1x16xf32, #tpu.memory_space<vmem>>, %arg14: memref<8x16xf32, #tpu.memory_space<vmem>>, %arg15: memref<16x24xbf16, #tpu.memory_space<vmem>>, %arg16: memref<1x2xf32, #tpu.memory_space<vmem>>, %arg17: memref<1x2xf32, #tpu.memory_space<vmem>>, %arg18: memref<1x4xf32, #tpu.memory_space<vmem>>, %arg19: memref<1x4xf32, #tpu.memory_space<vmem>>) attributes {dimension_semantics = [#tpu.dimension_semantics<arbitrary>], iteration_bounds = array<i64: 4>, scalar_prefetch = 0 : i64, scratch_operands = 5 : i64, tpu.core_type = #tpu.core_type<tc>, window_params = [{transform_indices = @transform_0, window_bounds = array<i64: 16, 8, 4>}, {pipeline_mode = #tpu.pipeline_mode<synchronous>, transform_indices = @transform_1, window_bounds = array<i64: 4, 8>}, {pipeline_mode = #tpu.pipeline_mode<synchronous>, transform_indices = @transform_2, window_bounds = array<i64: 1, 8>}, {pipeline_mode = #tpu.pipeline_mode<synchronous>, transform_indices = @transform_3, window_bounds = array<i64: 8, 16>}, {pipeline_mode = #tpu.pipeline_mode<synchronous>, transform_indices = @transform_4, window_bounds = array<i64: 1, 16>}, {pipeline_mode = #tpu.pipeline_mode<synchronous>, transform_indices = @transform_5, window_bounds = array<i64: 8, 2>}, {pipeline_mode = #tpu.pipeline_mode<synchronous>, transform_indices = @transform_6, window_bounds = array<i64: 2, 8>}, {pipeline_mode = #tpu.pipeline_mode<synchronous>, transform_indices = @transform_7, window_bounds = array<i64: 1, 8>}, {pipeline_mode = #tpu.pipeline_mode<synchronous>, transform_indices = @transform_8, window_bounds = array<i64: 16, 4>}, {pipeline_mode = #tpu.pipeline_mode<synchronous>, transform_indices = @transform_9, window_bounds = array<i64: 4, 16>}, {pipeline_mode = #tpu.pipeline_mode<synchronous>, transform_indices = @transform_10, window_bounds = array<i64: 1, 16>}, {pipeline_mode = #tpu.pipeline_mode<synchronous>, transform_indices = @transform_11, window_bounds = array<i64: 24, 16>}, {pipeline_mode = #tpu.pipeline_mode<synchronous>, transform_indices = @transform_12, window_bounds = array<i64: 1, 16>}, {transform_indices = @transform_13, window_bounds = array<i64: 8, 16>}]} {
    %c0_i32 = arith.constant 0 : i32
    %0 = arith.cmpi eq, %arg0, %c0_i32 : i32
    %1 = arith.extui %0 : i1 to i32
    %c0_i32_0 = arith.constant 0 : i32
    %2 = arith.cmpi ne, %1, %c0_i32_0 : i32
    scf.if %2 {
      %cst = arith.constant 0.000000e+00 : f32
      %9 = vector.broadcast %cst : f32 to vector<1x2xf32>
      %c0 = arith.constant 0 : index
      %c0_4 = arith.constant 0 : index
      %10 = vector.load %arg16[%c0, %c0_4] : memref<1x2xf32, #tpu.memory_space<vmem>>, vector<1x2xf32>
      tpu.vector_store %arg16[%c0, %c0_4], %9 {strides = array<i32>} : memref<1x2xf32, #tpu.memory_space<vmem>>, vector<1x2xf32>,
      %cst_5 = arith.constant 0.000000e+00 : f32
      %11 = vector.broadcast %cst_5 : f32 to vector<1x2xf32>
      %c0_6 = arith.constant 0 : index
      %c0_7 = arith.constant 0 : index
      %12 = vector.load %arg17[%c0_6, %c0_7] : memref<1x2xf32, #tpu.memory_space<vmem>>, vector<1x2xf32>
      tpu.vector_store %arg17[%c0_6, %c0_7], %11 {strides = array<i32>} : memref<1x2xf32, #tpu.memory_space<vmem>>, vector<1x2xf32>,
      %cst_8 = arith.constant 0.000000e+00 : f32
      %13 = vector.broadcast %cst_8 : f32 to vector<1x4xf32>
      %c0_9 = arith.constant 0 : index
      %c0_10 = arith.constant 0 : index
      %14 = vector.load %arg18[%c0_9, %c0_10] : memref<1x4xf32, #tpu.memory_space<vmem>>, vector<1x4xf32>
      tpu.vector_store %arg18[%c0_9, %c0_10], %13 {strides = array<i32>} : memref<1x4xf32, #tpu.memory_space<vmem>>, vector<1x4xf32>,
      %cst_11 = arith.constant 0.000000e+00 : f32
      %15 = vector.broadcast %cst_11 : f32 to vector<1x4xf32>
      %c0_12 = arith.constant 0 : index
      %c0_13 = arith.constant 0 : index
      %16 = vector.load %arg19[%c0_12, %c0_13] : memref<1x4xf32, #tpu.memory_space<vmem>>, vector<1x4xf32>
      tpu.vector_store %arg19[%c0_12, %c0_13], %15 {strides = array<i32>} : memref<1x4xf32, #tpu.memory_space<vmem>>, vector<1x4xf32>,
    } else {
    }
    %c2_i32 = arith.constant 2 : i32
    %3 = arith.cmpi slt, %arg0, %c2_i32 : i32
    %4 = arith.extui %3 : i1 to i32
    %c0_i32_1 = arith.constant 0 : i32
    %5 = arith.cmpi ne, %4, %c0_i32_1 : i32
    scf.if %5 {
      %c8_i32 = arith.constant 8 : i32
      %9 = arith.muli %arg0, %c8_i32 : i32
      %10 = tpu.assume_multiple %9, 8 : i32
      %c0 = arith.constant 0 : index
      %c0_4 = arith.constant 0 : index
      %c0_5 = arith.constant 0 : index
      %11 = vector.load %arg1[%c0, %c0_4, %c0_5] : memref<16x8x4xbf16, #tpu.memory_space<vmem>>, vector<16x8x4xbf16>
      %12 = vector.shape_cast %11 : vector<16x8x4xbf16> to vector<128x4xbf16>
      %c0_6 = arith.constant 0 : index
      %c0_7 = arith.constant 0 : index
      %13 = vector.load %arg2[%c0_6, %c0_7] : memref<4x8xbf16, #tpu.memory_space<vmem>>, vector<4x8xbf16>
      %cst = arith.constant dense<0.000000e+00> : vector<128x8xf32>
      %14 = tpu.matmul %12, %13, %cst {dimension_numbers = #tpu.dot_dimension_numbers<[1], [0], [0], [1], [0, 0, 1, 1], [], []>} : vector<128x4xbf16>, vector<4x8xbf16>, vector<128x8xf32> -> vector<128x8xf32>
      %c0_8 = arith.constant 0 : index
      %c0_9 = arith.constant 0 : index
      %15 = vector.load %arg3[%c0_8, %c0_9] : memref<1x8xf32, #tpu.memory_space<vmem>>, vector<1x8xf32>
      %16 = vector.broadcast %15 : vector<1x8xf32> to vector<128x8xf32>
      %17 = arith.addf %14, %16 : vector<128x8xf32>
      %cst_10 = arith.constant 0.000000e+00 : f32
      %18 = vector.broadcast %cst_10 : f32 to vector<128x8xf32>
      %19 = arith.maximumf %17, %18 : vector<128x8xf32>
      %20 = vector.shape_cast %19 : vector<128x8xf32> to vector<16x8x8xf32>
      %cst_11 = arith.constant dense<0xFF800000> : vector<8x8xf32>
      %21 = vector.multi_reduction <maximumf>, %20, %cst_11 [0] : vector<16x8x8xf32> to vector<8x8xf32>
      %22 = arith.truncf %21 : vector<8x8xf32> to vector<8x8xbf16>
      %23 = arith.index_cast %10 : i32 to index
      %c0_12 = arith.constant 0 : index
      %24 = vector.load %arg15[%23, %c0_12] : memref<16x24xbf16, #tpu.memory_space<vmem>>, vector<8x8xbf16>
      tpu.vector_store %arg15[%23, %c0_12], %22 {strides = array<i32>} : memref<16x24xbf16, #tpu.memory_space<vmem>>, vector<8x8xbf16>,
      %c0_13 = arith.constant 0 : index
      %c0_14 = arith.constant 0 : index
      %25 = vector.load %arg6[%c0_13, %c0_14] : memref<8x2xbf16, #tpu.memory_space<vmem>>, vector<8x2xbf16>
      %cst_15 = arith.constant dense<0.000000e+00> : vector<8x2xf32>
      %26 = tpu.matmul %22, %25, %cst_15 {dimension_numbers = #tpu.dot_dimension_numbers<[1], [0], [0], [1], [0, 0, 1, 1], [], []>} : vector<8x8xbf16>, vector<8x2xbf16>, vector<8x2xf32> -> vector<8x2xf32>
      %c0_16 = arith.constant 0 : index
      %c0_17 = arith.constant 0 : index
      %27 = vector.load %arg16[%c0_16, %c0_17] : memref<1x2xf32, #tpu.memory_space<vmem>>, vector<1x2xf32>
      %cst_18 = arith.constant dense<0.000000e+00> : vector<2xf32>
      %28 = vector.multi_reduction <add>, %26, %cst_18 [0] : vector<8x2xf32> to vector<2xf32>
      %29 = vector.shape_cast %28 : vector<2xf32> to vector<1x2xf32>
      %30 = arith.addf %27, %29 : vector<1x2xf32>
      %c0_19 = arith.constant 0 : index
      %c0_20 = arith.constant 0 : index
      %31 = vector.load %arg16[%c0_19, %c0_20] : memref<1x2xf32, #tpu.memory_space<vmem>>, vector<1x2xf32>
      tpu.vector_store %arg16[%c0_19, %c0_20], %30 {strides = array<i32>} : memref<1x2xf32, #tpu.memory_space<vmem>>, vector<1x2xf32>,
      %c0_21 = arith.constant 0 : index
      %c0_22 = arith.constant 0 : index
      %32 = vector.load %arg17[%c0_21, %c0_22] : memref<1x2xf32, #tpu.memory_space<vmem>>, vector<1x2xf32>
      %33 = arith.mulf %26, %26 : vector<8x2xf32>
      %cst_23 = arith.constant dense<0.000000e+00> : vector<2xf32>
      %34 = vector.multi_reduction <add>, %33, %cst_23 [0] : vector<8x2xf32> to vector<2xf32>
      %35 = vector.shape_cast %34 : vector<2xf32> to vector<1x2xf32>
      %36 = arith.addf %32, %35 : vector<1x2xf32>
      %c0_24 = arith.constant 0 : index
      %c0_25 = arith.constant 0 : index
      %37 = vector.load %arg17[%c0_24, %c0_25] : memref<1x2xf32, #tpu.memory_space<vmem>>, vector<1x2xf32>
      tpu.vector_store %arg17[%c0_24, %c0_25], %36 {strides = array<i32>} : memref<1x2xf32, #tpu.memory_space<vmem>>, vector<1x2xf32>,
      %38 = arith.truncf %19 : vector<128x8xf32> to vector<128x8xbf16>
      %c0_26 = arith.constant 0 : index
      %c0_27 = arith.constant 0 : index
      %39 = vector.load %arg4[%c0_26, %c0_27] : memref<8x16xbf16, #tpu.memory_space<vmem>>, vector<8x16xbf16>
      %cst_28 = arith.constant dense<0.000000e+00> : vector<128x16xf32>
      %40 = tpu.matmul %38, %39, %cst_28 {dimension_numbers = #tpu.dot_dimension_numbers<[1], [0], [0], [1], [0, 0, 1, 1], [], []>} : vector<128x8xbf16>, vector<8x16xbf16>, vector<128x16xf32> -> vector<128x16xf32>
      %c0_29 = arith.constant 0 : index
      %c0_30 = arith.constant 0 : index
      %41 = vector.load %arg5[%c0_29, %c0_30] : memref<1x16xf32, #tpu.memory_space<vmem>>, vector<1x16xf32>
      %42 = vector.broadcast %41 : vector<1x16xf32> to vector<128x16xf32>
      %43 = arith.addf %40, %42 : vector<128x16xf32>
      %cst_31 = arith.constant 0.000000e+00 : f32
      %44 = vector.broadcast %cst_31 : f32 to vector<128x16xf32>
      %45 = arith.maximumf %43, %44 : vector<128x16xf32>
      %46 = vector.shape_cast %45 : vector<128x16xf32> to vector<16x8x16xf32>
      %cst_32 = arith.constant dense<0xFF800000> : vector<8x16xf32>
      %47 = vector.multi_reduction <maximumf>, %46, %cst_32 [0] : vector<16x8x16xf32> to vector<8x16xf32>
      %48 = arith.truncf %47 : vector<8x16xf32> to vector<8x16xbf16>
      %49 = arith.index_cast %10 : i32 to index
      %c8 = arith.constant 8 : index
      %50 = vector.load %arg15[%49, %c8] : memref<16x24xbf16, #tpu.memory_space<vmem>>, vector<8x16xbf16>
      tpu.vector_store %arg15[%49, %c8], %48 {strides = array<i32>} : memref<16x24xbf16, #tpu.memory_space<vmem>>, vector<8x16xbf16>,
      %c0_33 = arith.constant 0 : index
      %c0_34 = arith.constant 0 : index
      %51 = vector.load %arg9[%c0_33, %c0_34] : memref<16x4xbf16, #tpu.memory_space<vmem>>, vector<16x4xbf16>
      %cst_35 = arith.constant dense<0.000000e+00> : vector<8x4xf32>
      %52 = tpu.matmul %48, %51, %cst_35 {dimension_numbers = #tpu.dot_dimension_numbers<[1], [0], [0], [1], [0, 0, 1, 1], [], []>} : vector<8x16xbf16>, vector<16x4xbf16>, vector<8x4xf32> -> vector<8x4xf32>
      %c0_36 = arith.constant 0 : index
      %c0_37 = arith.constant 0 : index
      %53 = vector.load %arg18[%c0_36, %c0_37] : memref<1x4xf32, #tpu.memory_space<vmem>>, vector<1x4xf32>
      %cst_38 = arith.constant dense<0.000000e+00> : vector<4xf32>
      %54 = vector.multi_reduction <add>, %52, %cst_38 [0] : vector<8x4xf32> to vector<4xf32>
      %55 = vector.shape_cast %54 : vector<4xf32> to vector<1x4xf32>
      %56 = arith.addf %53, %55 : vector<1x4xf32>
      %c0_39 = arith.constant 0 : index
      %c0_40 = arith.constant 0 : index
      %57 = vector.load %arg18[%c0_39, %c0_40] : memref<1x4xf32, #tpu.memory_space<vmem>>, vector<1x4xf32>
      tpu.vector_store %arg18[%c0_39, %c0_40], %56 {strides = array<i32>} : memref<1x4xf32, #tpu.memory_space<vmem>>, vector<1x4xf32>,
      %c0_41 = arith.constant 0 : index
      %c0_42 = arith.constant 0 : index
      %58 = vector.load %arg19[%c0_41, %c0_42] : memref<1x4xf32, #tpu.memory_space<vmem>>, vector<1x4xf32>
      %59 = arith.mulf %52, %52 : vector<8x4xf32>
      %cst_43 = arith.constant dense<0.000000e+00> : vector<4xf32>
      %60 = vector.multi_reduction <add>, %59, %cst_43 [0] : vector<8x4xf32> to vector<4xf32>
      %61 = vector.shape_cast %60 : vector<4xf32> to vector<1x4xf32>
      %62 = arith.addf %58, %61 : vector<1x4xf32>
      %c0_44 = arith.constant 0 : index
      %c0_45 = arith.constant 0 : index
      %63 = vector.load %arg19[%c0_44, %c0_45] : memref<1x4xf32, #tpu.memory_space<vmem>>, vector<1x4xf32>
      tpu.vector_store %arg19[%c0_44, %c0_45], %62 {strides = array<i32>} : memref<1x4xf32, #tpu.memory_space<vmem>>, vector<1x4xf32>,
    } else {
    }
    %c2_i32_2 = arith.constant 2 : i32
    %6 = arith.cmpi sge, %arg0, %c2_i32_2 : i32
    %7 = arith.extui %6 : i1 to i32
    %c0_i32_3 = arith.constant 0 : i32
    %8 = arith.cmpi ne, %7, %c0_i32_3 : i32
    scf.if %8 {
      %c2_i32_4 = arith.constant 2 : i32
      %9 = arith.subi %arg0, %c2_i32_4 : i32
      %c8_i32 = arith.constant 8 : i32
      %10 = arith.muli %9, %c8_i32 : i32
      %11 = tpu.assume_multiple %10, 8 : i32
      %12 = arith.index_cast %11 : i32 to index
      %c0 = arith.constant 0 : index
      %13 = vector.load %arg15[%12, %c0] : memref<16x24xbf16, #tpu.memory_space<vmem>>, vector<8x24xbf16>
      %14 = vector.extract_strided_slice %13 {offsets = [0, 0], sizes = [8, 8], strides = [1, 1]} : vector<8x24xbf16> to vector<8x8xbf16>
      %c0_5 = arith.constant 0 : index
      %c0_6 = arith.constant 0 : index
      %15 = vector.load %arg6[%c0_5, %c0_6] : memref<8x2xbf16, #tpu.memory_space<vmem>>, vector<8x2xbf16>
      %cst = arith.constant dense<0.000000e+00> : vector<8x2xf32>
      %16 = tpu.matmul %14, %15, %cst {dimension_numbers = #tpu.dot_dimension_numbers<[1], [0], [0], [1], [0, 0, 1, 1], [], []>} : vector<8x8xbf16>, vector<8x2xbf16>, vector<8x2xf32> -> vector<8x2xf32>
      %c0_7 = arith.constant 0 : index
      %c0_8 = arith.constant 0 : index
      %17 = vector.load %arg16[%c0_7, %c0_8] : memref<1x2xf32, #tpu.memory_space<vmem>>, vector<1x2xf32>
      %cst_9 = arith.constant 6.250000e-02 : f32
      %18 = vector.broadcast %cst_9 : f32 to vector<1x2xf32>
      %19 = arith.mulf %17, %18 : vector<1x2xf32>
      %c0_10 = arith.constant 0 : index
      %c0_11 = arith.constant 0 : index
      %20 = vector.load %arg17[%c0_10, %c0_11] : memref<1x2xf32, #tpu.memory_space<vmem>>, vector<1x2xf32>
      %cst_12 = arith.constant 6.250000e-02 : f32
      %21 = vector.broadcast %cst_12 : f32 to vector<1x2xf32>
      %22 = arith.mulf %20, %21 : vector<1x2xf32>
      %23 = arith.mulf %19, %19 : vector<1x2xf32>
      %24 = arith.subf %22, %23 : vector<1x2xf32>
      %cst_13 = arith.constant 0.000000e+00 : f32
      %25 = vector.broadcast %cst_13 : f32 to vector<1x2xf32>
      %26 = arith.maximumf %24, %25 : vector<1x2xf32>
      %cst_14 = arith.constant 9.99999974E-6 : f32
      %27 = vector.broadcast %cst_14 : f32 to vector<1x2xf32>
      %28 = arith.addf %26, %27 : vector<1x2xf32>
      %29 = math.rsqrt %28 : vector<1x2xf32>
      %30 = vector.broadcast %19 : vector<1x2xf32> to vector<8x2xf32>
      %31 = arith.subf %16, %30 : vector<8x2xf32>
      %32 = vector.broadcast %29 : vector<1x2xf32> to vector<8x2xf32>
      %33 = arith.mulf %31, %32 : vector<8x2xf32>
      %cst_15 = arith.constant 0.000000e+00 : f32
      %34 = vector.broadcast %cst_15 : f32 to vector<8x2xf32>
      %35 = arith.maximumf %33, %34 : vector<8x2xf32>
      %36 = arith.truncf %35 : vector<8x2xf32> to vector<8x2xbf16>
      %c0_16 = arith.constant 0 : index
      %c0_17 = arith.constant 0 : index
      %37 = vector.load %arg7[%c0_16, %c0_17] : memref<2x8xbf16, #tpu.memory_space<vmem>>, vector<2x8xbf16>
      %cst_18 = arith.constant dense<0.000000e+00> : vector<8x8xf32>
      %38 = tpu.matmul %36, %37, %cst_18 {dimension_numbers = #tpu.dot_dimension_numbers<[1], [0], [0], [1], [0, 0, 1, 1], [], []>} : vector<8x2xbf16>, vector<2x8xbf16>, vector<8x8xf32> -> vector<8x8xf32>
      %c0_19 = arith.constant 0 : index
      %c0_20 = arith.constant 0 : index
      %39 = vector.load %arg8[%c0_19, %c0_20] : memref<1x8xf32, #tpu.memory_space<vmem>>, vector<1x8xf32>
      %40 = vector.broadcast %39 : vector<1x8xf32> to vector<8x8xf32>
      %41 = arith.addf %38, %40 : vector<8x8xf32>
      %cst_21 = arith.constant 0.000000e+00 : f32
      %42 = vector.broadcast %cst_21 : f32 to vector<8x8xf32>
      %43 = arith.subf %42, %41 : vector<8x8xf32>
      %44 = math.exp %43 : vector<8x8xf32>
      %cst_22 = arith.constant 1.000000e+00 : f32
      %45 = vector.broadcast %cst_22 : f32 to vector<8x8xf32>
      %46 = arith.addf %45, %44 : vector<8x8xf32>
      %cst_23 = arith.constant 1.000000e+00 : f32
      %47 = vector.broadcast %cst_23 : f32 to vector<8x8xf32>
      %48 = arith.divf %47, %46 : vector<8x8xf32>
      %49 = arith.extf %14 : vector<8x8xbf16> to vector<8x8xf32>
      %cst_24 = arith.constant 1.000000e+00 : f32
      %50 = vector.broadcast %cst_24 : f32 to vector<8x8xf32>
      %51 = arith.addf %50, %48 : vector<8x8xf32>
      %52 = arith.mulf %49, %51 : vector<8x8xf32>
      %53 = arith.truncf %52 : vector<8x8xf32> to vector<8x8xbf16>
      %54 = arith.index_cast %11 : i32 to index
      %c0_25 = arith.constant 0 : index
      %55 = vector.load %arg15[%54, %c0_25] : memref<16x24xbf16, #tpu.memory_space<vmem>>, vector<8x8xbf16>
      tpu.vector_store %arg15[%54, %c0_25], %53 {strides = array<i32>} : memref<16x24xbf16, #tpu.memory_space<vmem>>, vector<8x8xbf16>,
      %56 = vector.extract_strided_slice %13 {offsets = [0, 8], sizes = [8, 16], strides = [1, 1]} : vector<8x24xbf16> to vector<8x16xbf16>
      %c0_26 = arith.constant 0 : index
      %c0_27 = arith.constant 0 : index
      %57 = vector.load %arg9[%c0_26, %c0_27] : memref<16x4xbf16, #tpu.memory_space<vmem>>, vector<16x4xbf16>
      %cst_28 = arith.constant dense<0.000000e+00> : vector<8x4xf32>
      %58 = tpu.matmul %56, %57, %cst_28 {dimension_numbers = #tpu.dot_dimension_numbers<[1], [0], [0], [1], [0, 0, 1, 1], [], []>} : vector<8x16xbf16>, vector<16x4xbf16>, vector<8x4xf32> -> vector<8x4xf32>
      %c0_29 = arith.constant 0 : index
      %c0_30 = arith.constant 0 : index
      %59 = vector.load %arg18[%c0_29, %c0_30] : memref<1x4xf32, #tpu.memory_space<vmem>>, vector<1x4xf32>
      %cst_31 = arith.constant 6.250000e-02 : f32
      %60 = vector.broadcast %cst_31 : f32 to vector<1x4xf32>
      %61 = arith.mulf %59, %60 : vector<1x4xf32>
      %c0_32 = arith.constant 0 : index
      %c0_33 = arith.constant 0 : index
      %62 = vector.load %arg19[%c0_32, %c0_33] : memref<1x4xf32, #tpu.memory_space<vmem>>, vector<1x4xf32>
      %cst_34 = arith.constant 6.250000e-02 : f32
      %63 = vector.broadcast %cst_34 : f32 to vector<1x4xf32>
      %64 = arith.mulf %62, %63 : vector<1x4xf32>
      %65 = arith.mulf %61, %61 : vector<1x4xf32>
      %66 = arith.subf %64, %65 : vector<1x4xf32>
      %cst_35 = arith.constant 0.000000e+00 : f32
      %67 = vector.broadcast %cst_35 : f32 to vector<1x4xf32>
      %68 = arith.maximumf %66, %67 : vector<1x4xf32>
      %cst_36 = arith.constant 9.99999974E-6 : f32
      %69 = vector.broadcast %cst_36 : f32 to vector<1x4xf32>
      %70 = arith.addf %68, %69 : vector<1x4xf32>
      %71 = math.rsqrt %70 : vector<1x4xf32>
      %72 = vector.broadcast %61 : vector<1x4xf32> to vector<8x4xf32>
      %73 = arith.subf %58, %72 : vector<8x4xf32>
      %74 = vector.broadcast %71 : vector<1x4xf32> to vector<8x4xf32>
      %75 = arith.mulf %73, %74 : vector<8x4xf32>
      %cst_37 = arith.constant 0.000000e+00 : f32
      %76 = vector.broadcast %cst_37 : f32 to vector<8x4xf32>
      %77 = arith.maximumf %75, %76 : vector<8x4xf32>
      %78 = arith.truncf %77 : vector<8x4xf32> to vector<8x4xbf16>
      %c0_38 = arith.constant 0 : index
      %c0_39 = arith.constant 0 : index
      %79 = vector.load %arg10[%c0_38, %c0_39] : memref<4x16xbf16, #tpu.memory_space<vmem>>, vector<4x16xbf16>
      %cst_40 = arith.constant dense<0.000000e+00> : vector<8x16xf32>
      %80 = tpu.matmul %78, %79, %cst_40 {dimension_numbers = #tpu.dot_dimension_numbers<[1], [0], [0], [1], [0, 0, 1, 1], [], []>} : vector<8x4xbf16>, vector<4x16xbf16>, vector<8x16xf32> -> vector<8x16xf32>
      %c0_41 = arith.constant 0 : index
      %c0_42 = arith.constant 0 : index
      %81 = vector.load %arg11[%c0_41, %c0_42] : memref<1x16xf32, #tpu.memory_space<vmem>>, vector<1x16xf32>
      %82 = vector.broadcast %81 : vector<1x16xf32> to vector<8x16xf32>
      %83 = arith.addf %80, %82 : vector<8x16xf32>
      %cst_43 = arith.constant 0.000000e+00 : f32
      %84 = vector.broadcast %cst_43 : f32 to vector<8x16xf32>
      %85 = arith.subf %84, %83 : vector<8x16xf32>
      %86 = math.exp %85 : vector<8x16xf32>
      %cst_44 = arith.constant 1.000000e+00 : f32
      %87 = vector.broadcast %cst_44 : f32 to vector<8x16xf32>
      %88 = arith.addf %87, %86 : vector<8x16xf32>
      %cst_45 = arith.constant 1.000000e+00 : f32
      %89 = vector.broadcast %cst_45 : f32 to vector<8x16xf32>
      %90 = arith.divf %89, %88 : vector<8x16xf32>
      %91 = arith.extf %56 : vector<8x16xbf16> to vector<8x16xf32>
      %cst_46 = arith.constant 1.000000e+00 : f32
      %92 = vector.broadcast %cst_46 : f32 to vector<8x16xf32>
      %93 = arith.addf %92, %90 : vector<8x16xf32>
      %94 = arith.mulf %91, %93 : vector<8x16xf32>
      %95 = arith.truncf %94 : vector<8x16xf32> to vector<8x16xbf16>
      %96 = arith.index_cast %11 : i32 to index
      %c8 = arith.constant 8 : index
      %97 = vector.load %arg15[%96, %c8] : memref<16x24xbf16, #tpu.memory_space<vmem>>, vector<8x16xbf16>
      tpu.vector_store %arg15[%96, %c8], %95 {strides = array<i32>} : memref<16x24xbf16, #tpu.memory_space<vmem>>, vector<8x16xbf16>,
      %98 = arith.index_cast %11 : i32 to index
      %c0_47 = arith.constant 0 : index
      %99 = vector.load %arg15[%98, %c0_47] : memref<16x24xbf16, #tpu.memory_space<vmem>>, vector<8x24xbf16>
      %c0_48 = arith.constant 0 : index
      %c0_49 = arith.constant 0 : index
      %100 = vector.load %arg12[%c0_48, %c0_49] : memref<24x16xbf16, #tpu.memory_space<vmem>>, vector<24x16xbf16>
      %cst_50 = arith.constant dense<0.000000e+00> : vector<8x16xf32>
      %101 = tpu.matmul %99, %100, %cst_50 {dimension_numbers = #tpu.dot_dimension_numbers<[1], [0], [0], [1], [0, 0, 1, 1], [], []>} : vector<8x24xbf16>, vector<24x16xbf16>, vector<8x16xf32> -> vector<8x16xf32>
      %c0_51 = arith.constant 0 : index
      %c0_52 = arith.constant 0 : index
      %102 = vector.load %arg13[%c0_51, %c0_52] : memref<1x16xf32, #tpu.memory_space<vmem>>, vector<1x16xf32>
      %103 = vector.broadcast %102 : vector<1x16xf32> to vector<8x16xf32>
      %104 = arith.addf %101, %103 : vector<8x16xf32>
      %cst_53 = arith.constant 0.000000e+00 : f32
      %105 = vector.broadcast %cst_53 : f32 to vector<8x16xf32>
      %106 = arith.maximumf %104, %105 : vector<8x16xf32>
      %c0_54 = arith.constant 0 : index
      %c0_55 = arith.constant 0 : index
      %107 = vector.load %arg14[%c0_54, %c0_55] : memref<8x16xf32, #tpu.memory_space<vmem>>, vector<8x16xf32>
      tpu.vector_store %arg14[%c0_54, %c0_55], %106 {strides = array<i32>} : memref<8x16xf32, #tpu.memory_space<vmem>>, vector<8x16xf32>,
    } else {
    }
    return
  }
  func.func @transform_0(%arg0: i32) -> (i32, i32, i32) {
    %c1_i32 = arith.constant 1 : i32
    %0 = arith.minsi %arg0, %c1_i32 : i32
    %c0_i32 = arith.constant 0 : i32
    %c0_i32_0 = arith.constant 0 : i32
    %c0_i32_1 = arith.constant 0 : i32
    return %c0_i32, %0, %c0_i32_0 : i32, i32, i32
  }
  func.func @transform_1(%arg0: i32) -> (i32, i32) {
    %c0_i32 = arith.constant 0 : i32
    %c0_i32_0 = arith.constant 0 : i32
    %c0_i32_1 = arith.constant 0 : i32
    return %c0_i32, %c0_i32_0 : i32, i32
  }
  func.func @transform_2(%arg0: i32) -> (i32, i32) {
    %c0_i32 = arith.constant 0 : i32
    %c0_i32_0 = arith.constant 0 : i32
    %c0_i32_1 = arith.constant 0 : i32
    return %c0_i32, %c0_i32_0 : i32, i32
  }
  func.func @transform_3(%arg0: i32) -> (i32, i32) {
    %c0_i32 = arith.constant 0 : i32
    %c0_i32_0 = arith.constant 0 : i32
    %c0_i32_1 = arith.constant 0 : i32
    return %c0_i32, %c0_i32_0 : i32, i32
  }
  func.func @transform_4(%arg0: i32) -> (i32, i32) {
    %c0_i32 = arith.constant 0 : i32
    %c0_i32_0 = arith.constant 0 : i32
    %c0_i32_1 = arith.constant 0 : i32
    return %c0_i32, %c0_i32_0 : i32, i32
  }
  func.func @transform_5(%arg0: i32) -> (i32, i32) {
    %c0_i32 = arith.constant 0 : i32
    %c0_i32_0 = arith.constant 0 : i32
    %c0_i32_1 = arith.constant 0 : i32
    return %c0_i32, %c0_i32_0 : i32, i32
  }
  func.func @transform_6(%arg0: i32) -> (i32, i32) {
    %c0_i32 = arith.constant 0 : i32
    %c0_i32_0 = arith.constant 0 : i32
    %c0_i32_1 = arith.constant 0 : i32
    return %c0_i32, %c0_i32_0 : i32, i32
  }
  func.func @transform_7(%arg0: i32) -> (i32, i32) {
    %c0_i32 = arith.constant 0 : i32
    %c0_i32_0 = arith.constant 0 : i32
    %c0_i32_1 = arith.constant 0 : i32
    return %c0_i32, %c0_i32_0 : i32, i32
  }
  func.func @transform_8(%arg0: i32) -> (i32, i32) {
    %c0_i32 = arith.constant 0 : i32
    %c0_i32_0 = arith.constant 0 : i32
    %c0_i32_1 = arith.constant 0 : i32
    return %c0_i32, %c0_i32_0 : i32, i32
  }
  func.func @transform_9(%arg0: i32) -> (i32, i32) {
    %c0_i32 = arith.constant 0 : i32
    %c0_i32_0 = arith.constant 0 : i32
    %c0_i32_1 = arith.constant 0 : i32
    return %c0_i32, %c0_i32_0 : i32, i32
  }
  func.func @transform_10(%arg0: i32) -> (i32, i32) {
    %c0_i32 = arith.constant 0 : i32
    %c0_i32_0 = arith.constant 0 : i32
    %c0_i32_1 = arith.constant 0 : i32
    return %c0_i32, %c0_i32_0 : i32, i32
  }
  func.func @transform_11(%arg0: i32) -> (i32, i32) {
    %c0_i32 = arith.constant 0 : i32
    %c0_i32_0 = arith.constant 0 : i32
    %c0_i32_1 = arith.constant 0 : i32
    return %c0_i32, %c0_i32_0 : i32, i32
  }
  func.func @transform_12(%arg0: i32) -> (i32, i32) {
    %c0_i32 = arith.constant 0 : i32
    %c0_i32_0 = arith.constant 0 : i32
    %c0_i32_1 = arith.constant 0 : i32
    return %c0_i32, %c0_i32_0 : i32, i32
  }
  func.func @transform_13(%arg0: i32) -> (i32, i32) {
    %c2_i32 = arith.constant 2 : i32
    %0 = arith.subi %arg0, %c2_i32 : i32
    %c0_i32 = arith.constant 0 : i32
    %1 = arith.maxsi %0, %c0_i32 : i32
    %c0_i32_0 = arith.constant 0 : i32
    %c0_i32_1 = arith.constant 0 : i32
    return %1, %c0_i32_0 : i32, i32
  }
}

</mosaic_0001>

<bundles_post_ra>
// kernel: amlp_forward.1
= control target key start
LH: loop header
LB: loop body
LE: loop exit
PB: predicated region body
PF: predicated region fallthrough
CT: control target
= control target key end

     0   :  { %s2415_s0 = inlined_call_operand.vmem [shape: bf16[16,16,4], index: 0, kind: input, shape index: {}]   ;;  %s2416_s1 = inlined_call_operand.vmem [shape: bf16[4,8], index: 1, kind: input, shape index: {}]   ;;  %s2417_s2 = inlined_call_operand.vmem [shape: f32[1,8], index: 2, kind: input, shape index: {}]   ;;  %s2418_s3 = inlined_call_operand.vmem [shape: bf16[8,16], index: 3, kind: input, shape index: {}]   ;;  %s2419_s4 = inlined_call_operand.vmem [shape: f32[1,16], index: 4, kind: input, shape index: {}]   ;;  %s2420_s5 = inlined_call_operand.vmem [shape: bf16[8,2], index: 5, kind: input, shape index: {}]   ;;  %s2421_s6 = inlined_call_operand.vmem [shape: bf16[2,8], index: 6, kind: input, shape index: {}]   ;;  %s2422_s7 = inlined_call_operand.vmem [shape: f32[1,8], index: 7, kind: input, shape index: {}]   ;;  %s2423_s8 = inlined_call_operand.vmem [shape: bf16[16,4], index: 8, kind: input, shape index: {}]   ;;  %s2424_s9 = inlined_call_operand.vmem [shape: bf16[4,16], index: 9, kind: input, shape index: {}]   ;;  %s2425_s10 = inlined_call_operand.vmem [shape: f32[1,16], index: 10, kind: input, shape index: {}]   ;;  %s2426_s11 = inlined_call_operand.vmem [shape: bf16[24,16], index: 11, kind: input, shape index: {}]   ;;  %s2427_s12 = inlined_call_operand.vmem [shape: f32[1,16], index: 12, kind: input, shape index: {}]   ;;  %s2428_s13 = inlined_call_operand.hbm [shape: f32[16,16], index: 13, kind: output, shape index: {}]  }
   0x1   :  { %2432 = sst [smem:[#allocation13_spill]] %s2415_s0 }
   0x2   :  { %2433 = sst [smem:[#allocation14_spill]] %s2416_s1 }
   0x3   :  { %2434 = sst [smem:[#allocation15_spill]] %s2417_s2 }
   0x4   :  { %2435 = sst [smem:[#allocation16_spill]] %s2418_s3 }
   0x5   :  { %2436 = sst [smem:[#allocation17_spill]] %s2427_s12 }
   0x6   :  { %2437 = sst [smem:[#allocation18_spill]] %s2428_s13 }
   0x7   :  { %18 = vsyncpa [#allocation9], 0 }
   0x8   :  { %20 = vsyncpa [#allocation9 + $0x1], 0  ;;  %s2048_s25 = smov 0   ;;  %s2050_s26 = smov 0  }
   0x9   :  { %s2052_s27 = smov 0   ;;  %s2054_s28 = smov 0  }
   0xa   :  { %s2056_s29 = smov 0   ;;  %s2058_s30 = smov 0  }
   0xb LB: > { %s2079_s14 = sadd.s32 4294967295, %s1967_s30   ;;  %s1622_s15 = sadd.s32 4294967294, %s1967_s30   ;;  %s1967_s30 = sphi %s2058_s30, %s2449_s30   ;;  %s1963_s29 = sphi %s2056_s29, %s2455_s29   ;;  %s1959_s28 = sphi %s2054_s28, %s2454_s28   ;;  %s1955_s27 = sphi %s2052_s27, %s2453_s27   ;;  %s1951_s26 = sphi %s2050_s26, %s2452_s26   ;;  %s1947_s25 = sphi %s2048_s25, %s2451_s25  }
   0xc   : > { %s2083_s16 = sadd.s32 1, %s1967_s30   ;;  %p30_p0 = scmp.lt.s32.totalorder %s1967_s30, 1 }
   0xd   : > { %2438 = sst [smem:[#allocation11_spill]] %s2083_s16  ;;  %p32_p1 = scmp.lt.s32.totalorder %s2083_s16, 1 }
   0xe   : > { %s37_s17 = sadd.s32 1, %s1963_s29  ;;  %p44_p2 = scmp.ne.s32.totalorder %s1963_s29, %s1959_s28 }
   0xf   : > { %s2089_s18 = scalar_select %p30_p0, %s1967_s30, 1 }
  0x10   : > { %s33_s19 = scalar_select %p32_p1, %s2083_s16, 1 }
  0x11   : > { %p45_p3 = scmp.eq.s32.totalorder %s1967_s30, 0  ;;  %p313_p4 = scmp.gt.s32.totalorder %s1622_s15, 0 }
  0x12   : > { %s34_s20 = ssub.s32 %s2089_s18, %s33_s19  ;;  %s1624_s24 = sadd.s32 4294967294, %s2083_s16 }
  0x13   : > { %p35_p5 = scmp.eq.s32.totalorder %s34_s20, 0  ;;  %p2096_p6 = por %p45_p3, %p44_p2 }
  0x14   : > { %s314_s22 = scalar_select %p313_p4, %s1622_s15, 0 }
  0x15   : > { %s2101_s23 = scalar_select %p35_p5, %s1963_s29, %s37_s17  }
  0x16   : > { %p316_p7 = scmp.gt.s32.totalorder %s1624_s24, 0  ;;  %p331_p8 = scmp.ne.s32.totalorder %s1955_s27, %s1951_s26 }
  0x17   : > { %2440 = sst [smem:[#allocation12_spill]] %s2101_s23  ;;  %p332_p9 = scmp.eq.s32.totalorder %s2079_s14, 3 }
  0x18   : > { %p337_p10 = scmp.ne.s32.totalorder %s1951_s26, %s1947_s25  ;;  %s2457_s24 = smov (!%p316_p7, %s1624_s24), 0 }
  0x19   : > { %p2109_p11 = por %p332_p9, %p331_p8  ;;  %p338_p12 = scmp.eq.s32.totalorder %s1622_s15, 3 }
  0x1a   : > { %s318_s19 = ssub.s32 %s314_s22, %s2457_s24  ;;  %s321_s20 = sadd.s32 1, %s1955_s27 }
  0x1b   : > { %p319_p13 = scmp.eq.s32.totalorder %s318_s19, 0  ;;  %p2114_p0 = por %p338_p12, %p337_p10 }
  0x1c   : > { %p1626_p1 = scmp.ge.s32.totalorder %s1967_s30, 4 }
  0x1d   : > { %s2119_s17 = scalar_select %p319_p13, %s1955_s27, %s321_s20  }
  0x1e   : > { %390 = sbr.rel (%p1626_p1) target bundleno = 55 (0x37), region = 64 }
  0x23   : > { %393 = sbr.rel (!%p2096_p6) target bundleno = 55 (0x37), region = 68  ;;  %s395_s23 = sand.u32 (%p2096_p6), 1, %s1963_s29  }
  0x24   : > { %s1628_s16 = sshll.u32 (%p2096_p6), %s2089_s18, 2  ;;  %s1627_s15 = sshll.u32 (%p2096_p6), %s395_s23, 6 }
  0x25   : > { %s2443_s0 = sld [smem:[#allocation13_spill]] (%p2096_p6)  ;;  %s397_s21 = scalar_lea.vmem (%p2096_p6), [#allocation7], %s1627_s15 }
  0x2b   : > { %s2129_s19 = scalar_lea.vmem %s2443_s0, %s1628_s16 }
  0x2c   : > { %v418_v0 = vld [vmem:[%s2129_s19] sm:$0xf]  ;;  %v420_v1 = vld [vmem:[%s2129_s19 + $0x8] sm:$0xf]  ;;  %v422_v2 = vld [vmem:[%s2129_s19 + $0x10] sm:$0xf] }
  0x2d   : > { %419 = vst [vmem:[%s397_s21] sm:$0xf] %v418_v0  ;;  %421 = vst [vmem:[%s397_s21 + $0x4] sm:$0xf] %v420_v1  ;;  %v424_v3 = vld [vmem:[%s2129_s19 + $0x18] sm:$0xf] }
  0x2e   : > { %v426_v4 = vld [vmem:[%s2129_s19 + $0x20] sm:$0xf]  ;;  %423 = vst [vmem:[%s397_s21 + $0x8] sm:$0xf] %v422_v2  ;;  %425 = vst [vmem:[%s397_s21 + $0xc] sm:$0xf] %v424_v3 }
  0x2f   : > { %427 = vst [vmem:[%s397_s21 + $0x10] sm:$0xf] %v426_v4  ;;  %v428_v5 = vld [vmem:[%s2129_s19 + $0x28] sm:$0xf]  ;;  %v430_v6 = vld [vmem:[%s2129_s19 + $0x30] sm:$0xf] }
  0x30   : > { %v432_v7 = vld [vmem:[%s2129_s19 + $0x38] sm:$0xf]  ;;  %429 = vst [vmem:[%s397_s21 + $0x14] sm:$0xf] %v428_v5  ;;  %431 = vst [vmem:[%s397_s21 + $0x18] sm:$0xf] %v430_v6 }
  0x31   : > { %433 = vst [vmem:[%s397_s21 + $0x1c] sm:$0xf] %v432_v7  ;;  %v434_v8 = vld [vmem:[%s2129_s19 + $0x40] sm:$0xf]  ;;  %v436_v9 = vld [vmem:[%s2129_s19 + $0x48] sm:$0xf] }
  0x32   : > { %v438_v10 = vld [vmem:[%s2129_s19 + $0x50] sm:$0xf]  ;;  %435 = vst [vmem:[%s397_s21 + $0x20] sm:$0xf] %v434_v8  ;;  %437 = vst [vmem:[%s397_s21 + $0x24] sm:$0xf] %v436_v9 }
  0x33   : > { %439 = vst [vmem:[%s397_s21 + $0x28] sm:$0xf] %v438_v10  ;;  %v440_v11 = vld [vmem:[%s2129_s19 + $0x58] sm:$0xf]  ;;  %v442_v12 = vld [vmem:[%s2129_s19 + $0x60] sm:$0xf] }
  0x34   : > { %v444_v13 = vld [vmem:[%s2129_s19 + $0x68] sm:$0xf]  ;;  %441 = vst [vmem:[%s397_s21 + $0x2c] sm:$0xf] %v440_v11  ;;  %443 = vst [vmem:[%s397_s21 + $0x30] sm:$0xf] %v442_v12 }
  0x35   : > { %445 = vst [vmem:[%s397_s21 + $0x34] sm:$0xf] %v444_v13  ;;  %v446_v14 = vld [vmem:[%s2129_s19 + $0x70] sm:$0xf]  ;;  %v448_v15 = vld [vmem:[%s2129_s19 + $0x78] sm:$0xf] }
  0x36   : > { %447 = vst [vmem:[%s397_s21 + $0x38] sm:$0xf] %v446_v14  ;;  %449 = vst [vmem:[%s397_s21 + $0x3c] sm:$0xf] %v448_v15 }
  0x37 PF: > { %p1629_p2 = scmp.ge.s32.totalorder %s1967_s30, 1  ;;  %p504_p3 = scmp.lt.s32.totalorder %s1967_s30, 5 }
  0x39   : > { %p505_p4 = pnand %p1629_p2, %p504_p3 }
  0x3a   : > { %s511_s16 = sand.u32 (!%p505_p4), 1, %s1959_s28   ;;  %s551_s18 = sand.u32 (!%p505_p4), 1, %s1951_s26  }
  0x3b   : > { %508 = sbr.rel (%p505_p4) target bundleno = 1686 (0x696), region = 109  ;;  %s1630_s23 = sshll.u32 (!%p505_p4), %s511_s16, 6 }
  0x3c   : > { %s2153_s20 = sshll.u32 (!%p505_p4), %s551_s18, 3  ;;  %s2155_s15 = scalar_lea.vmem (!%p505_p4), [#allocation7], %s1630_s23 }
  0x3d   : > { %s553_s22 = scalar_lea.vmem (!%p505_p4), [#allocation8], %s2153_s20  ;;  %p1632_p5 = scmp.ne.s32.totalorder (!%p505_p4), %s2079_s14, 0 }
  0x40   : > { %563 = sbr.rel (%p1632_p5) target bundleno = 72 (0x48), region = 117 }
  0x45   : > { %vm564_vm0 = vcmask 8192   ;;  %vm567_vm1 = vcmask 24576   ;;  %v1969_v16 = vmov 0.0  }
  0x46   : > { %565 = vst.msk [vmem:[#allocation3] sm:$0x1] %vm564_vm0, %v1969_v16  ;;  %566 = vst.msk [vmem:[#allocation4] sm:$0x1] %vm564_vm0, %v1969_v16 }
  0x47   : > { %568 = vst.msk [vmem:[#allocation5] sm:$0x1] %vm567_vm1, %v1969_v16  ;;  %569 = vst.msk [vmem:[#allocation6] sm:$0x1] %vm567_vm1, %v1969_v16 }
  0x48 PF: > { %p1633_p6 = scmp.ge.s32.totalorder %s2079_s14, 2 }
  0x49   : > { %s2444_s1 = sld [smem:[#allocation14_spill]] (!%p1633_p6)  ;;  %s1634_s24 = sshll.u32 (!%p1633_p6), %s2079_s14, 3 }
  0x4a   : > { %573 = sbr.rel (%p1633_p6) target bundleno = 775 (0x307), region = 121  ;;  %s2445_s3 = sld [smem:[#allocation16_spill]] (!%p1633_p6) }
  0x4b   : > { %s2446_s2 = sld [smem:[#allocation15_spill]] (!%p1633_p6)  ;;  %s814_s19 = sshra.s32 (!%p1633_p6), %s1634_s24, 3 }
  0x4c   : > { %s1652_s21 = sshll.u32 (!%p1633_p6), %s814_s19, 2  ;;  %s1972_s19 = smov (!%p1633_p6), 8  }
  0x4d   : > { %s2259_s16 = scalar_lea.vmem (!%p1633_p6), [#allocation2], %s1652_s21 }
  0x4f   : > { %v591_v17 = vld [vmem:[%s2444_s1] sm:$0x3]  ;;  %vm664_vm2 = vcmask 1041408   ;;  %v1866_v18 = vld [vmem:[%s2155_s15] sm:$0xff]   ;;  %vm639_vm3 = vcmask 31744   ;;  %v1867_v20 = vld [vmem:[%s2155_s15 + $0x8] sm:$0xff]  }
  0x50   : > { %1801 = vmatprep.subr.msk.bf16.mxu0 %vm664_vm2, %v591_v17  ;;  %v666_v19 = vsel %vm664_vm2, %v591_v17, 0  ;;  %1723 = vmatprep.mubr.msk.bf16.mxu0 %vm639_vm3, %v1866_v18  ;;  %v1868_v21 = vld [vmem:[%s2155_s15 + $0x10] sm:$0xff]   ;;  %v1869_v22 = vld [vmem:[%s2155_s15 + $0x18] sm:$0xff]   ;;  %v1870_v23 = vld [vmem:[%s2155_s15 + $0x20] sm:$0xff]   ;;  %vm824_vm4 = vcmask 1043456   ;;  %v1970_v28 = vmov 0.0  }
  0x51   : > { %1722 = vmatpush3.bf16.msra.mxu0 %v666_v19  ;;  %v1871_v24 = vld [vmem:[%s2155_s15 + $0x28] sm:$0xff]   ;;  %v1872_v25 = vld [vmem:[%s2155_s15 + $0x30] sm:$0xff]   ;;  %v1873_v26 = vld [vmem:[%s2155_s15 + $0x38] sm:$0xff]   ;;  %1739 = vmatprep.subr.bf16.mxu1 %v1970_v28  ;;  %vm1971_vm5 = vmmov 0   ;;  %vm781_vm6 = vcmask 64512   ;;  %vm818_vm7 = vcmask 60416  }
  0x52   : > { %v820_v27 = vld [vmem:[%s2420_s5] sm:$0xf]  ;;  %1741 = vmatprep.mubr.msk.bf16.mxu1 %vm1971_vm5, %v1970_v28  ;;  %1763 = vmatprep.subr.bf16.mxu0 %v1970_v28  ;;  %vm869_vm8 = vcmask 15360   ;;  %vm878_vm9 = vcmask 8192   ;;  %vm1047_vm10 = vcmask 130048   ;;  %vm1086_vm11 = vcmask 191552  }
  0x53   : > { %v826_v29 = vsel %vm824_vm4, %v820_v27, 0  ;;  %v899_v30 = vld [vmem:[%s2445_s3] sm:$0xf]  ;;  %vm1148_vm12 = vcmask 24576  }
  0x54   : > { %1724 = vmatmul.mubr.msk.bf16.vlgmr.msra.gmra.mxu0 %vm639_vm3, %v1867_v20  ;;  %1740 = vmatpush3.bf16.msra.mxu1 %v826_v29  ;;  %v2185_v31 = vsel %vm824_vm4, %v899_v30, 0  ;;  %v1635_v40 = vld [vmem:[%s2446_s2] ss:$0 sm:$0xff] }
  0x55   : > { %1727 = vmatprep.mubr.msk.bf16.mxu0 %vm639_vm3, %v1868_v21  ;;  %1802 = vmatprep.subr.msk.bf16.mxu1 %vm824_vm4, %v899_v30 }
  0x5c   : > { %1728 = vmatmul.mubr.msk.bf16.gmra.mxu0 %vm639_vm3, %v1869_v22 }
  0x5d   : > { %1731 = vmatprep.mubr.msk.bf16.mxu0 %vm639_vm3, %v1870_v23 }
  0x64   : > { %1732 = vmatmul.mubr.msk.bf16.gmra.mxu0 %vm639_vm3, %v1871_v24 }
  0x65   : > { %1735 = vmatprep.mubr.msk.bf16.mxu0 %vm639_vm3, %v1872_v25 }
  0x6c   : > { %1736 = vmatmul.mubr.msk.bf16.gmra.mxu0 %vm639_vm3, %v1873_v26 }
  0x6d   : > { %1765 = vmatprep.mubr.msk.bf16.mxu0 %vm1971_vm5, %v1970_v28 }
 0x114   : > { %v1725_v32 = vpop.f32.mrf.mxu0 }
 0x115   : > { %v2190_v42 = vadd.f32 %v1725_v32, %v1635_v40 }
 0x116   : > { %v702_v33 = vpop.f32.mrf.mxu0 }
 0x117   : > { %v767_v51 = vmax.f32 %v2190_v42, 0.0  ;;  %v2205_v52 = vadd.f32 %v1635_v40, %v702_v33 }
 0x118   : > { %v1726_v34 = vpop.f32.mrf.mxu0 }
 0x119   : > { %v2194_v45 = vadd.f32 %v1726_v34, %v1635_v40  ;;  %v784_v2 = vsel %vm781_vm6, %v767_v51, -inf  ;;  %v765_v3 = vmax.f32 %v2205_v52, 0.0 }
 0x11a   : > { %v705_v35 = vpop.f32.mrf.mxu0 }
 0x11b   : > { %v2207_v53 = vadd.f32 %v1635_v40, %v705_v35  ;;  %v768_v59 = vmax.f32 %v2194_v45, 0.0  ;;  %v782_v20 = vsel %vm781_vm6, %v765_v3, -inf }
 0x11c   : > { %v1729_v36 = vpop.f32.mrf.mxu0 }
 0x11d   : > { %v2196_v46 = vadd.f32 %v1729_v36, %v1635_v40  ;;  %v766_v4 = vmax.f32 %v2207_v53, 0.0  ;;  %v785_v11 = vsel %vm781_vm6, %v768_v59, -inf }
 0x11e   : > { %v718_v37 = vpop.f32.mrf.mxu0 }
 0x11f   : > { %v2198_v47 = vadd.f32 %v1635_v40, %v718_v37  ;;  %v771_v60 = vmax.f32 %v2196_v46, 0.0  ;;  %v783_v21 = vsel %vm781_vm6, %v766_v4, -inf }
 0x120   : > { %v1730_v38 = vpop.f32.mrf.mxu0 }
 0x121   : > { %v2192_v44 = vadd.f32 %v1730_v38, %v1635_v40  ;;  %v769_v61 = vmax.f32 %v2198_v47, 0.0  ;;  %v790_v12 = vsel %vm781_vm6, %v771_v60, -inf }
 0x122   : > { %v721_v39 = vpop.f32.mrf.mxu0  ;;  %v791_v29 = vmax.f32 %v784_v2, %v790_v12  ;;  %v868_v12 = vld [vmem:[#allocation3] sm:$0x1] }
 0x123   : > { %v2200_v48 = vadd.f32 %v1635_v40, %v721_v39  ;;  %v772_v56 = vmax.f32 %v2192_v44, 0.0  ;;  %v786_v13 = vsel %vm781_vm6, %v769_v61, -inf  ;;  %v1874_v44 = vld [vmem:[%s2423_s8] sm:$0xff]  }
 0x124   : > { %v1733_v41 = vpop.f32.mrf.mxu0  ;;  %v787_v30 = vmax.f32 %v782_v20, %v786_v13  ;;  %1764 = vmatpush3.bf16.msra.mxu0 %v1874_v44 }
 0x125   : > { %v2209_v54 = vadd.f32 %v1733_v41, %v1635_v40  ;;  %v770_v62 = vmax.f32 %v2200_v48, 0.0  ;;  %v792_v7 = vsel %vm781_vm6, %v772_v56, -inf  ;;  %v894_v2 = vpack.c.bf16 %v772_v56, %v771_v60 }
 0x126   : > { %v734_v43 = vpop.f32.mrf.mxu0  ;;  %v793_v22 = vmax.f32 %v785_v11, %v792_v7 }
 0x127   : > { %v2212_v57 = vadd.f32 %v1635_v40, %v734_v43  ;;  %v775_v5 = vmax.f32 %v2209_v54, 0.0  ;;  %v788_v14 = vsel %vm781_vm6, %v770_v62, -inf }
 0x128   : > { %v1734_v49 = vpop.f32.mrf.mxu0  ;;  %v789_v32 = vmax.f32 %v783_v21, %v788_v14 }
 0x129   : > { %v2202_v50 = vadd.f32 %v1734_v49, %v1635_v40  ;;  %v773_v8 = vmax.f32 %v2212_v57, 0.0  ;;  %v798_v23 = vsel %vm781_vm6, %v775_v5, -inf }
 0x12a   : > { %v737_v55 = vpop.f32.mrf.mxu0  ;;  %v799_v38 = vmax.f32 %v791_v29, %v798_v23 }
 0x12b   : > { %v2214_v58 = vadd.f32 %v1635_v40, %v737_v55  ;;  %v776_v0 = vmax.f32 %v2202_v50, 0.0  ;;  %v794_v25 = vsel %vm781_vm6, %v773_v8, -inf }
 0x12c   : > { %v1737_v63 = vpop.f32.mrf.mxu0  ;;  %v795_v39 = vmax.f32 %v787_v30, %v794_v25  ;;  %v1654_v25 = vld [vmem:[%s2419_s4] ss:$0 sm:$0xff] }
 0x12d   : > { %v2221_v1 = vadd.f32 %v1737_v63, %v1635_v40  ;;  %v774_v9 = vmax.f32 %v2214_v58, 0.0  ;;  %v800_v16 = vsel %vm781_vm6, %v776_v0, -inf  ;;  %v891_v58 = vpack.c.bf16 %v766_v4, %v765_v3 }
 0x12e   : > { %v750_v6 = vpop.f32.mrf.mxu0  ;;  %v801_v33 = vmax.f32 %v793_v22, %v800_v16  ;;  %v892_v63 = vpack.c.bf16 %v768_v59, %v767_v51  ;;  %v896_v42 = vpack.c.bf16 %v776_v0, %v775_v5  ;;  %v880_v16 = vld [vmem:[#allocation4] sm:$0x1] }
 0x12f   : > { %v751_v10 = vadd.f32 %v1635_v40, %v750_v6  ;;  %v779_v17 = vmax.f32 %v2221_v1, 0.0  ;;  %v796_v26 = vsel %vm781_vm6, %v774_v9, -inf  ;;  %v893_v1 = vpack.c.bf16 %v770_v62, %v769_v61 }
 0x130   : > { %v1738_v15 = vpop.f32.mrf.mxu0  ;;  %v797_v41 = vmax.f32 %v789_v32, %v796_v26 }
 0x131   : > { %v777_v18 = vmax.f32 %v751_v10, 0.0  ;;  %v762_v19 = vadd.f32 %v1738_v15, %v1635_v40  ;;  %v806_v34 = vsel %vm781_vm6, %v779_v17, -inf }
 0x132   : > { %v753_v24 = vpop.f32.mrf.mxu0 }
 0x133   : > { %v780_v27 = vmax.f32 %v762_v19, 0.0  ;;  %v754_v28 = vadd.f32 %v1635_v40, %v753_v24  ;;  %v802_v35 = vsel %vm781_vm6, %v777_v18, -inf  ;;  %v807_v40 = vmax.f32 %v799_v38, %v806_v34 }
 0x134   : > { %v803_v49 = vmax.f32 %v795_v39, %v802_v35 }
 0x135   : > { %v808_v36 = vsel %vm781_vm6, %v780_v27, -inf  ;;  %v778_v37 = vmax.f32 %v754_v28, 0.0  ;;  %v898_v47 = vpack.c.bf16 %v780_v27, %v779_v17 }
 0x136   : > { %v809_v43 = vmax.f32 %v801_v33, %v808_v36 }
 0x137   : > { %v804_v48 = vsel %vm781_vm6, %v778_v37, -inf  ;;  %v897_v45 = vpack.c.bf16 %v778_v37, %v777_v18 }
 0x138   : > { %v805_v52 = vmax.f32 %v797_v41, %v804_v48  ;;  %v811_v53 = vmax.f32 %v807_v40, %v809_v43 }
 0x13a   : > { %v810_v54 = vmax.f32 %v803_v49, %v805_v52 }
 0x13c   : > { %v812_v55 = vmax.f32 %v810_v54, %v811_v53 }
 0x13e   : > { %v813_v57 = vpack.c.bf16 %v812_v55, %v812_v55 }
 0x140   : > { %1742 = vmatmul.mubr.msk.bf16.vlgmr.msra.gmra.mxu1 %vm781_vm6, %v813_v57  ;;  %819 = vst.msk [vmem:[%s2259_s16] sm:$0xf] %vm818_vm7, %v813_v57 }
 0x141   : > { %1746 = vmatpush3.bf16.msra.mxu1 %v2185_v31  ;;  %1747 = vmatprep.mubr.msk.bf16.mxu1 %vm781_vm6, %v891_v58  ;;  %v895_v31 = vpack.c.bf16 %v774_v9, %v773_v8 }
 0x148   : > { %1748 = vmatmul.mubr.msk.bf16.vlgmr.msra.gmra.mxu1 %vm781_vm6, %v892_v63 }
 0x149   : > { %1751 = vmatprep.mubr.msk.bf16.mxu1 %vm781_vm6, %v893_v1 }
 0x150   : > { %1752 = vmatmul.mubr.msk.bf16.gmra.mxu1 %vm781_vm6, %v894_v2 }
 0x151   : > { %1755 = vmatprep.mubr.msk.bf16.mxu1 %vm781_vm6, %v895_v31 }
 0x158   : > { %1756 = vmatmul.mubr.msk.bf16.gmra.mxu1 %vm781_vm6, %v896_v42 }
 0x159   : > { %1759 = vmatprep.mubr.msk.bf16.mxu1 %vm781_vm6, %v897_v45 }
 0x160   : > { %1760 = vmatmul.mubr.msk.bf16.gmra.mxu1 %vm781_vm6, %v898_v47 }
 0x200   : > { %v862_v46 = vpop.f32.mrf.mxu1 }
 0x201   : > { %v870_v51 = vsel %vm869_vm8, %v862_v46, 0.0  ;;  %v881_v56 = vmul.f32 %v862_v46, %v862_v46 }
 0x202   : > { %v871_v59 = vrot.slane %v870_v51, 4  ;;  %v1743_v50 = vpop.f32.mrf.mxu1 }
 0x203   : > { %v882_v60 = vsel %vm869_vm8, %v881_v56, 0.0 }
 0x204   : > { %v872_v61 = vadd.f32 %v871_v59, %v870_v51  ;;  %v883_v62 = vrot.slane %v882_v60, 4  ;;  %v865_v0 = vpop.f32.mrf.mxu1 }
 0x206   : > { %v873_v3 = vrot.slane %v872_v61, 2  ;;  %v884_v4 = vadd.f32 %v883_v62, %v882_v60  ;;  %v1744_v5 = vpop.f32.mrf.mxu1 }
 0x208   : > { %v874_v6 = vadd.f32 %v873_v3, %v872_v61  ;;  %v885_v7 = vrot.slane %v884_v4, 2  ;;  %v1749_v8 = vpop.f32.mrf.mxu1 }
 0x209   : > { %v977_v27 = vadd.f32 %v1749_v8, %v1654_v25 }
 0x20a   : > { %v875_v9 = vrot.slane %v874_v6, 1  ;;  %v886_v10 = vadd.f32 %v885_v7, %v884_v4  ;;  %v968_v11 = vpop.f32.mrf.mxu1 }
 0x20b   : > { %v1033_v37 = vmax.f32 %v977_v27, 0.0  ;;  %v969_v38 = vadd.f32 %v1654_v25, %v968_v11 }
 0x20c   : > { %v876_v13 = vadd.f32 %v875_v9, %v874_v6  ;;  %v887_v14 = vrot.slane %v886_v10, 1  ;;  %v1750_v15 = vpop.f32.mrf.mxu1 }
 0x20d   : > { %v980_v30 = vadd.f32 %v1750_v15, %v1654_v25  ;;  %v1050_v1 = vsel %vm1047_vm10, %v1033_v37, -inf  ;;  %v1031_v2 = vmax.f32 %v969_v38, 0.0 }
 0x20e   : > { %v877_v17 = vadd.f32 %v876_v13, %v868_v12  ;;  %v888_v18 = vadd.f32 %v887_v14, %v886_v10  ;;  %v971_v19 = vpop.f32.mrf.mxu1 }
 0x20f   : > { %v972_v39 = vadd.f32 %v1654_v25, %v971_v19  ;;  %v1034_v52 = vmax.f32 %v980_v30, 0.0  ;;  %v1048_v5 = vsel %vm1047_vm10, %v1031_v2, -inf }
 0x210   : > { %879 = vst.msk [vmem:[#allocation3] sm:$0x1] %vm878_vm9, %v877_v17  ;;  %v889_v20 = vadd.f32 %v888_v18, %v880_v16  ;;  %v1753_v21 = vpop.f32.mrf.mxu1 }
 0x211   : > { %v993_v32 = vadd.f32 %v1753_v21, %v1654_v25  ;;  %v1032_v31 = vmax.f32 %v972_v39, 0.0  ;;  %v1051_v56 = vsel %vm1047_vm10, %v1034_v52, -inf }
 0x212   : > { %890 = vst.msk [vmem:[#allocation4] sm:$0x1] %vm878_vm9, %v889_v20  ;;  %v984_v22 = vpop.f32.mrf.mxu1 }
 0x213   : > { %v985_v33 = vadd.f32 %v1654_v25, %v984_v22  ;;  %v1037_v53 = vmax.f32 %v993_v32, 0.0  ;;  %v1049_v6 = vsel %vm1047_vm10, %v1032_v31, -inf }
 0x214   : > { %v1754_v23 = vpop.f32.mrf.mxu1 }
 0x215   : > { %v996_v29 = vadd.f32 %v1754_v23, %v1654_v25  ;;  %v1035_v54 = vmax.f32 %v985_v33, 0.0  ;;  %v1056_v59 = vsel %vm1047_vm10, %v1037_v53, -inf }
 0x216   : > { %v987_v24 = vpop.f32.mrf.mxu1  ;;  %v1057_v14 = vmax.f32 %v1050_v1, %v1056_v59  ;;  %v1139_v1 = vld [vmem:[#allocation5] sm:$0x1] }
 0x217   : > { %v988_v34 = vadd.f32 %v1654_v25, %v987_v24  ;;  %v1038_v48 = vmax.f32 %v996_v29, 0.0  ;;  %v1052_v50 = vsel %vm1047_vm10, %v1035_v54, -inf }
 0x218   : > { %v1757_v26 = vpop.f32.mrf.mxu1  ;;  %v1053_v15 = vmax.f32 %v1048_v5, %v1052_v50 }
 0x219   : > { %v1009_v41 = vadd.f32 %v1757_v26, %v1654_v25  ;;  %v1036_v55 = vmax.f32 %v988_v34, 0.0  ;;  %v1058_v47 = vsel %vm1047_vm10, %v1038_v48, -inf }
 0x21a   : > { %v1000_v28 = vpop.f32.mrf.mxu1  ;;  %v1059_v7 = vmax.f32 %v1051_v56, %v1058_v47 }
 0x21b   : > { %v1001_v40 = vadd.f32 %v1654_v25, %v1000_v28  ;;  %v1041_v42 = vmax.f32 %v1009_v41, 0.0  ;;  %v1054_v60 = vsel %vm1047_vm10, %v1036_v55, -inf }
 0x21c   : > { %v1758_v35 = vpop.f32.mrf.mxu1  ;;  %v1055_v16 = vmax.f32 %v1049_v6, %v1054_v60 }
 0x21d   : > { %v1012_v36 = vadd.f32 %v1758_v35, %v1654_v25  ;;  %v1039_v44 = vmax.f32 %v1001_v40, 0.0  ;;  %v1064_v8 = vsel %vm1047_vm10, %v1041_v42, -inf  ;;  %v1150_v42 = vld [vmem:[#allocation6] sm:$0x1] }
 0x21e   : > { %v1003_v43 = vpop.f32.mrf.mxu1  ;;  %v1065_v22 = vmax.f32 %v1057_v14, %v1064_v8 }
 0x21f   : > { %v1004_v49 = vadd.f32 %v1654_v25, %v1003_v43  ;;  %v1042_v58 = vmax.f32 %v1012_v36, 0.0  ;;  %v1060_v10 = vsel %vm1047_vm10, %v1039_v44, -inf }
 0x220   : > { %v1761_v57 = vpop.f32.mrf.mxu1  ;;  %v1061_v23 = vmax.f32 %v1053_v15, %v1060_v10 }
 0x221   : > { %v1025_v63 = vadd.f32 %v1761_v57, %v1654_v25  ;;  %v1040_v46 = vmax.f32 %v1004_v49, 0.0  ;;  %v1066_v62 = vsel %vm1047_vm10, %v1042_v58, -inf }
 0x222   : > { %v1016_v45 = vpop.f32.mrf.mxu1  ;;  %v1067_v17 = vmax.f32 %v1059_v7, %v1066_v62 }
 0x223   : > { %v1017_v51 = vadd.f32 %v1654_v25, %v1016_v45  ;;  %v1045_v0 = vmax.f32 %v1025_v63, 0.0  ;;  %v1062_v11 = vsel %vm1047_vm10, %v1040_v46, -inf }
 0x224   : > { %v1762_v61 = vpop.f32.mrf.mxu1  ;;  %v1063_v24 = vmax.f32 %v1055_v16, %v1062_v11 }
 0x225   : > { %v1043_v3 = vmax.f32 %v1017_v51, 0.0  ;;  %v1028_v4 = vadd.f32 %v1762_v61, %v1654_v25  ;;  %v1072_v18 = vsel %vm1047_vm10, %v1045_v0, -inf }
 0x226   : > { %v1019_v9 = vpop.f32.mrf.mxu1  ;;  %v1073_v28 = vmax.f32 %v1065_v22, %v1072_v18 }
 0x227   : > { %v1046_v12 = vmax.f32 %v1028_v4, 0.0  ;;  %v1020_v13 = vadd.f32 %v1654_v25, %v1019_v9  ;;  %v1068_v19 = vsel %vm1047_vm10, %v1043_v3, -inf }
 0x228   : > { %v1069_v25 = vmax.f32 %v1061_v23, %v1068_v19 }
 0x229   : > { %v1074_v20 = vsel %vm1047_vm10, %v1046_v12, -inf  ;;  %v1044_v21 = vmax.f32 %v1020_v13, 0.0 }
 0x22a   : > { %v1075_v26 = vmax.f32 %v1067_v17, %v1074_v20 }
 0x22b   : > { %v1070_v27 = vsel %vm1047_vm10, %v1044_v21, -inf }
 0x22c   : > { %v1071_v29 = vmax.f32 %v1063_v24, %v1070_v27  ;;  %v1077_v32 = vmax.f32 %v1073_v28, %v1075_v26 }
 0x22e   : > { %v1076_v30 = vmax.f32 %v1069_v25, %v1071_v29 }
 0x230   : > { %v1078_v33 = vmax.f32 %v1076_v30, %v1077_v32 }
 0x232   : > { %v1079_v34 = vpack.c.bf16 %v1078_v33, %v1078_v33 }
 0x234   : > { %1083 = vrot.lane.b32.xlu0 %v1079_v34, %s1972_s19  ;;  %1766 = vmatmul.mubr.msk.bf16.vlgmr.msra.gmra.mxu0 %vm1047_vm10, %v1079_v34 }
 0x2a6   : > { %v1084_v35 = vpop.permute.xlu0 %1083 }
 0x2a7   : > { %1087 = vst.msk [vmem:[%s2259_s16] sm:$0xf] %vm1086_vm11, %v1084_v35 }
 0x2f4   : > { %v1133_v36 = vpop.f32.mrf.mxu0 }
 0x2f5   : > { %v1140_v37 = vsel %vm639_vm3, %v1133_v36, 0.0  ;;  %v1151_v38 = vmul.f32 %v1133_v36, %v1133_v36 }
 0x2f6   : > { %v1141_v39 = vrot.slane %v1140_v37, 4  ;;  %v1767_v41 = vpop.f32.mrf.mxu0 }
 0x2f7   : > { %v1152_v43 = vsel %vm639_vm3, %v1151_v38, 0.0 }
 0x2f8   : > { %v1142_v48 = vadd.f32 %v1141_v39, %v1140_v37  ;;  %v1153_v40 = vrot.slane %v1152_v43, 4  ;;  %v1136_v49 = vpop.f32.mrf.mxu0 }
 0x2fa   : > { %v1143_v52 = vrot.slane %v1142_v48, 2  ;;  %v1154_v53 = vadd.f32 %v1153_v40, %v1152_v43  ;;  %v1768_v54 = vpop.f32.mrf.mxu0 }
 0x2fc   : > { %v1144_v55 = vadd.f32 %v1143_v52, %v1142_v48  ;;  %v1155_v57 = vrot.slane %v1154_v53, 2 }
 0x2fe   : > { %v1145_v58 = vrot.slane %v1144_v55, 1  ;;  %v1156_v63 = vadd.f32 %v1155_v57, %v1154_v53 }
 0x300   : > { %v1146_v2 = vadd.f32 %v1145_v58, %v1144_v55  ;;  %v1157_v31 = vrot.slane %v1156_v63, 1 }
 0x302   : > { %v1147_v45 = vadd.f32 %v1146_v2, %v1139_v1  ;;  %v1158_v47 = vadd.f32 %v1157_v31, %v1156_v63 }
 0x304   : > { %1149 = vst.msk [vmem:[#allocation5] sm:$0x1] %vm1148_vm12, %v1147_v45  ;;  %v1159_v44 = vadd.f32 %v1158_v47, %v1150_v42 }
 0x306   : > { %1160 = vst.msk [vmem:[#allocation6] sm:$0x1] %vm1148_vm12, %v1159_v44 }
 0x307 PF: > { %p1666_p7 = scmp.lt.s32.totalorder %s2079_s14, 2 }
 0x308   : > { %s1667_s21 = sadd.s32 (!%p1666_p7), 4294967294, %s2079_s14  ;;  %s1975_s23 = smov (!%p1666_p7), 120  }
 0x309   : > { %1164 = sbr.rel (%p1666_p7) target bundleno = 1660 (0x67c), region = 125  ;;  %s1668_s15 = sshll.u32 (!%p1666_p7), %s1667_s21, 3 }
 0x30a   : > { %s1167_s28 = sshra.s32 (!%p1666_p7), %s1668_s15, 3  ;;  %s1976_s15 = smov (!%p1666_p7), 8  }
 0x30b   : > { %s1669_s24 = sshll.u32 (!%p1666_p7), %s1167_s28, 2  ;;  %s2447_s19 = sld [smem:[#allocation17_spill]] (!%p1666_p7) }
 0x30c   : > { %s2325_s21 = scalar_lea.vmem (!%p1666_p7), [#allocation2], %s1669_s24 }
 0x30e   : > { %v1172_v46 = vld [vmem:[%s2420_s5] sm:$0xf]  ;;  %vm1177_vm13 = vcmask 1043456   ;;  %v1973_v51 = vmov 0.0   ;;  %vm1974_vm14 = vmmov 0   ;;  %vm1173_vm15 = vcmask 64512  }
 0x30f   : > { %1769 = vmatprep.subr.bf16.mxu0 %v1973_v51  ;;  %v1179_v56 = vsel %vm1177_vm13, %v1172_v46, 0  ;;  %1775 = vmatprep.subr.bf16.mxu1 %v1973_v51  ;;  %v1877_v59 = vld [vmem:[%s2423_s8] sm:$0xff]   ;;  %vm1258_vm0 = vcmask 1040384   ;;  %v1876_v0 = vld [vmem:[%s2426_s11 + $0x8] ss:$0 sps:$4 sm:$0xff]   ;;  %vm1327_vm1 = vcmask 130048   ;;  %v1231_v13 = vlaneseq }
 0x310   : > { %1770 = vmatpush3.bf16.msra.mxu0 %v1179_v56  ;;  %1771 = vmatprep.mubr.msk.bf16.mxu0 %vm1974_vm14, %v1973_v51  ;;  %v2328_v50 = vld [vmem:[%s2325_s21] sm:$0xf]  ;;  %v1492_v3 = vsel %vm1177_vm13, %v1876_v0, 0  ;;  %v1221_v5 = vld [vmem:[#allocation3] sm:$0x1]  ;;  %vm1408_vm2 = vcmask 1041408  }
 0x311   : > { %1781 = vmatprep.subr.bf16.mxu0 %v1973_v51  ;;  %1777 = vmatprep.mubr.msk.bf16.mxu1 %vm1974_vm14, %v1973_v51  ;;  %v1673_v60 = vcombine.low %v2328_v50, %v2328_v50  ;;  %v1246_v61 = vld [vmem:[%s2421_s6] sm:$0x1]  ;;  %v1222_v6 = vmul.f32 0.0625, %v1221_v5  ;;  %v1223_v7 = vld [vmem:[#allocation4] sm:$0x1]  ;;  %v1232_v14 = vshrl.u32 %v1231_v13, 7  ;;  %v1308_v46 = vunpack.c.l.bf16 %v2328_v50 }
 0x312   : > { %v1260_v62 = vsel %vm1258_vm0, %v1246_v61, 0  ;;  %v1224_v8 = vmul.f32 0.0625, %v1223_v7  ;;  %v1396_v24 = vld [vmem:[%s2424_s9] sm:$0x3]  ;;  %vm1254_vm3 = vcmask 15360   ;;  %vm1404_vm4 = vcmask 31744  }
 0x313   : > { %1772 = vmatmul.mubr.msk.bf16.vlgmr.msra.gmra.mxu0 %vm1173_vm15, %v2328_v50  ;;  %1319 = vrot.lane.b32.xlu0 %v1673_v60, %s1975_s23  ;;  %v1225_v9 = vmul.f32 %v1222_v6, %v1222_v6  ;;  %v1233_v15 = vsub.s32 0, %v1232_v14  ;;  %v1410_v25 = vsel %vm1408_vm2, %v1396_v24, 0  ;;  %v1371_v29 = vld [vmem:[#allocation5] sm:$0x1]  ;;  %v1373_v32 = vld [vmem:[#allocation6] sm:$0x1] }
 0x314   : > { %1782 = vmatpush3.bf16.msra.mxu0 %v1877_v59  ;;  %1783 = vmatprep.mubr.msk.bf16.mxu0 %vm1974_vm14, %v1973_v51  ;;  %v1372_v30 = vmul.f32 0.0625, %v1371_v29  ;;  %v1374_v33 = vmul.f32 0.0625, %v1373_v32  ;;  %v1671_v57 = vld [vmem:[%s2422_s7] ss:$0 sm:$0xff]  ;;  %vm1312_vm5 = vcmask 60416   ;;  %vm1465_vm6 = vcmask 191552  }
 0x315   : > { %1793 = vmatprep.subr.bf16.mxu0 %v1973_v51  ;;  %1776 = vmatpush3.bf16.msra.mxu1 %v1260_v62  ;;  %v1226_v10 = vsub.f32 %v1224_v8, %v1225_v9  ;;  %v1234_v17 = vrot.slane %v1222_v6, %v1233_v15  ;;  %v1676_v61 = vld [vmem:[%s2425_s10] ss:$0 sm:$0xff]  ;;  %vm1487_vm7 = vcmask 195584  }
 0x316   : > { %1787 = vmatprep.subr.bf16.mxu1 %v1973_v51  ;;  %v1375_v34 = vmul.f32 %v1372_v30, %v1372_v30  ;;  %v1384_v39 = vrot.slane %v1372_v30, %v1233_v15  ;;  %v1878_v9 = vld [vmem:[%s2426_s11] sm:$0xff]  }
 0x317   : > { %v1227_v11 = vmax.f32 %v1226_v10, 0.0 }
 0x318   : > { %v1376_v35 = vsub.f32 %v1374_v33, %v1375_v34 }
 0x319   : > { %v1228_v12 = vadd.f32 1e-05, %v1227_v11 }
 0x31a   : > { %v1377_v36 = vmax.f32 %v1376_v35, 0.0 }
 0x31b   : > { %1879 = vrsqrt.f32 %v1228_v12 }
 0x31c   : > { %v1378_v37 = vadd.f32 1e-05, %v1377_v36 }
 0x31e   : > { %1881 = vrsqrt.f32 %v1378_v37 }
 0x328   : > { %v1880_v16 = vpop.eup %1879 }
 0x329   : > { %v1241_v18 = vrot.slane %v1880_v16, %v1233_v15  ;;  %v1678_v16 = vld [vmem:[%s2447_s19] ss:$0 sm:$0xff] }
 0x32b   : > { %v1882_v38 = vpop.eup %1881 }
 0x32c   : > { %v1391_v41 = vrot.slane %v1882_v38, %v1233_v15 }
 0x385   : > { %v1320_v4 = vpop.permute.xlu0 %1319 }
 0x386   : > { %1784 = vmatmul.mubr.msk.bf16.vlgmr.msra.gmra.mxu0 %vm1327_vm1, %v1320_v4 }
 0x387   : > { %1794 = vmatpush3.bf16.msra.mxu0 %v1492_v3  ;;  %1797 = vmatprep.mubr.msk.bf16.mxu0 %vm1974_vm14, %v1973_v51 }
 0x388   : > { %1795 = vmatprep.subr.bf16.mxu0 %v1973_v51 }
 0x38b   : > { %1796 = vmatpush3.bf16.msra.mxu0 %v1878_v9 }
 0x3d3   : > { %v1215_v19 = vpop.f32.mrf.mxu0 }
 0x3d4   : > { %v1236_v20 = vsub.f32 %v1215_v19, %v1234_v17 }
 0x3d5   : > { %v1773_v21 = vpop.f32.mrf.mxu0 }
 0x3d6   : > { %v1243_v22 = vmul.f32 %v1241_v18, %v1236_v20 }
 0x3d7   : > { %v1218_v23 = vpop.f32.mrf.mxu0 }
 0x3d8   : > { %v1244_v26 = vmax.f32 %v1243_v22, 0.0 }
 0x3d9   : > { %v1774_v27 = vpop.f32.mrf.mxu0 }
 0x3da   : > { %v1245_v28 = vpack.c.bf16 %v1244_v26, %v1244_v26 }
 0x3dc   : > { %1778 = vmatmul.mubr.msk.bf16.vlgmr.msra.gmra.mxu1 %vm1254_vm3, %v1245_v28 }
 0x3dd   : > { %1788 = vmatpush3.bf16.msra.mxu1 %v1410_v25  ;;  %1789 = vmatprep.mubr.msk.bf16.mxu1 %vm1974_vm14, %v1973_v51 }
 0x446   : > { %v1365_v43 = vpop.f32.mrf.mxu0 }
 0x447   : > { %v1386_v48 = vsub.f32 %v1365_v43, %v1384_v39 }
 0x448   : > { %v1785_v40 = vpop.f32.mrf.mxu0 }
 0x449   : > { %v1393_v49 = vmul.f32 %v1391_v41, %v1386_v48 }
 0x44a   : > { %v1368_v52 = vpop.f32.mrf.mxu0 }
 0x44b   : > { %v1394_v53 = vmax.f32 %v1393_v49, 0.0 }
 0x44c   : > { %v1786_v54 = vpop.f32.mrf.mxu0 }
 0x44d   : > { %v1395_v55 = vpack.c.bf16 %v1394_v53, %v1394_v53 }
 0x44f   : > { %1790 = vmatmul.mubr.msk.bf16.vlgmr.msra.gmra.mxu1 %vm1404_vm4, %v1395_v55 }
 0x49c   : > { %v1296_v58 = vpop.f32.mrf.mxu1 }
 0x49d   : > { %v1297_v63 = vadd.f32 %v1671_v57, %v1296_v58 }
 0x49e   : > { %v1779_v1 = vpop.f32.mrf.mxu1 }
 0x49f   : > { %v1302_v2 = vsub.f32 0.0, %v1297_v63 }
 0x4a0   : > { %v1299_v31 = vpop.f32.mrf.mxu1 }
 0x4a1   : > { %v1303_v42 = vmul.f32 1.442695, %v1302_v2 }
 0x4a2   : > { %v1780_v45 = vpop.f32.mrf.mxu1 }
 0x4a3   : > { %1883 = vpow2.f32 %v1303_v42 }
 0x4b0   : > { %v1884_v47 = vpop.eup %1883 }
 0x4b1   : > { %v1305_v44 = vadd.f32 1.0, %v1884_v47 }
 0x4b3   : > { %1885 = vrcp.f32 %v1305_v44 }
 0x4c0   : > { %v1886_v51 = vpop.eup %1885 }
 0x4c1   : > { %v1309_v56 = vadd.f32 1.0, %v1886_v51 }
 0x4c3   : > { %v1310_v59 = vmul.f32 %v1309_v56, %v1308_v46 }
 0x4c5   : > { %v1311_v60 = vpack.c.bf16 %v1310_v59, %v1310_v59 }
 0x4c7   : > { %1313 = vst.msk [vmem:[%s2325_s21] sm:$0xf] %vm1312_vm5, %v1311_v60 }
 0x50f   : > { %v1446_v62 = vpop.f32.mrf.mxu1 }
 0x510   : > { %v1447_v0 = vadd.f32 %v1676_v61, %v1446_v62 }
 0x511   : > { %v1791_v3 = vpop.f32.mrf.mxu1 }
 0x512   : > { %v1452_v4 = vsub.f32 0.0, %v1447_v0 }
 0x513   : > { %v1449_v5 = vpop.f32.mrf.mxu1 }
 0x514   : > { %v1453_v6 = vmul.f32 1.442695, %v1452_v4 }
 0x515   : > { %v1792_v7 = vpop.f32.mrf.mxu1 }
 0x516   : > { %1887 = vpow2.f32 %v1453_v6 }
 0x523   : > { %v1888_v50 = vpop.eup %1887 }
 0x524   : > { %v1455_v8 = vadd.f32 1.0, %v1888_v50 }
 0x526   : > { %1889 = vrcp.f32 %v1455_v8 }
 0x533   : > { %v1890_v10 = vpop.eup %1889 }
 0x534   : > { %v1458_v11 = vadd.f32 1.0, %v1890_v10 }
 0x536   : > { %1460 = vrot.lane.b32.xlu0 %v1458_v11, %s1976_s15 }
 0x5a8   : > { %v1461_v12 = vpop.permute.xlu0 %1460 }
 0x5a9   : > { %v1463_v13 = vmul.f32 %v1461_v12, %v1308_v46 }
 0x5ab   : > { %v1464_v14 = vpack.c.bf16 %v1463_v13, %v1463_v13 }
 0x5ad   : > { %1466 = vst.msk [vmem:[%s2325_s21] sm:$0xf] %vm1465_vm6, %v1464_v14 }
 0x5b4   : > { %v1467_v15 = vld [vmem:[%s2325_s21] sm:$0xf] }
 0x5b5   : > { %1798 = vmatmul.mubr.msk.bf16.vlgmr.msra.gmra.mxu0 %vm1487_vm7, %v1467_v15 }
 0x675   : > { %v1528_v17 = vpop.f32.mrf.mxu0 }
 0x676   : > { %v1529_v18 = vadd.f32 %v1678_v16, %v1528_v17 }
 0x677   : > { %v1799_v19 = vpop.f32.mrf.mxu0 }
 0x678   : > { %v1534_v20 = vmax.f32 %v1529_v18, 0.0 }
 0x679   : > { %v1531_v21 = vpop.f32.mrf.mxu0 }
 0x67a   : > { %1535 = vst.msk [vmem:[%s553_s22] sm:$0xff] %vm1327_vm1, %v1534_v20 }
 0x67b   : > { %v1800_v22 = vpop.f32.mrf.mxu0 }
 0x67c PF: > { %s1683_s21 = sadd.s32 4294967294, %s2079_s14  ;;  %s1553_s16 = sshll.u32 %s553_s22, 4  ;;  %s1554_s16 = int_to_ptr.vmem [resolvable:$true] %s1553_s16 }
 0x67d   : > { %p1545_p8 = scmp.gt.s32.totalorder %s1683_s21, 0  ;;  %s2448_s24 = sld [smem:[#allocation18_spill]] }
 0x67e   : > { %s1537_s0 = scalar_lea.sflag [#allocation9], %s551_s18  ;;  %s1891_s1 = scalar_lea.vmem %s1554_s16, 128 }
 0x67f   : > { %s2459_s21 = smov (!%p1545_p8, %s1683_s21), 0  ;;  %p1892_p9 = scmp.ne.s32.totalorder %s1554_s16, %s1891_s1 }
 0x680   : > { %s1684_s23 = sshll.u32 %s2459_s21, 7  ;;  %s1977_s2 = smov [#allocation8]  }
 0x681   : > { %p1893_p10 = pnand %p1892_p9, %p2109_p11  ;;  %s1895_s3 = sshll.u32 %s1977_s2, 4  ;;  %s1896_s3 = int_to_ptr.vmem [resolvable:$false] %s1895_s3 }
 0x682   : > { %s1897_s14 = scalar_lea.vmem %s1896_s3, 256  ;;  %p1898_p13 = scmp.lt.s32.totalorder %s1554_s16, %s1896_s3 }
 0x683   : > { %s1551_s19 = scalar_lea.hbm %s2448_s24, %s1684_s23  ;;  %p1894_p12 = pneg %p1893_p10 }
 0x684   : > { %p1899_p1 = scmp.lt.s32.totalorder %s1897_s14, %s1891_s1 }
 0x686   : > { %p1900_p2 = por %p1899_p1, %p1898_p13 }
 0x688   : > { %p1901_p3 = pnand %p1900_p2, %p1894_p12 }
 0x68a   : > { %1904 = shalt.err (!%p1901_p3)
}
 0x68b   : > { %s1905_s20 = scalar_lea.hbm %s1551_s19, 128  ;;  %s1909_s21 = scalar_lea.hbm %s2448_s24, 256 }
 0x68c   : > { %p1906_p4 = scmp.ne.s32.totalorder %s1551_s19, %s1905_s20  ;;  %p1910_p7 = scmp.lt.s32.totalorder %s1551_s19, %s2448_s24 }
 0x68d   : > { %p1911_p8 = scmp.lt.s32.totalorder %s1909_s21, %s1905_s20 }
 0x68e   : > { %p1907_p5 = pnand %p1906_p4, %p2109_p11 }
 0x68f   : > { %p1912_p9 = por %p1911_p8, %p1910_p7 }
 0x690   : > { %p1908_p6 = pneg %p1907_p5 }
 0x692   : > { %p1913_p10 = pnand %p1912_p9, %p1908_p6 }
 0x694   : > { %1916 = shalt.err (!%p1913_p10)
}
 0x695   : > { %1803 = dma.vmem_to_hbm [thread:$0]  (%p2109_p11), %s1554_s16, 128, %s1551_s19, %s1537_s0  }
 0x696 PF: > { %p1809_p12 = scmp.ge.s32.totalorder %s1967_s30, 2  ;;  %s1565_s1 = sand.u32 1, %s1947_s25  }
 0x697   : > { %s1566_s2 = scalar_lea.sflag [#allocation9], %s1565_s1 }
 0x698   : > { %p1806_p13 = pnand %p1809_p12, %p2114_p0 }
 0x69a   : > { %p1807_p1 = pneg %p1806_p13 }
 0x69c   : > { %1942 = dma.done.wait (%p1807_p1), %s1566_s2, 128  }
 0x69d   : > { %1944 = vsyncadd (%p1807_p1), %s1566_s2, 4294967168  ;;  %s2449_s30 = sld [smem:[#allocation11_spill]]  ;;  %s2451_s25 = smov %s1951_s26 }
 0x69e   : > { %s2450_s3 = sld [smem:[#allocation12_spill]]  ;;  %s2452_s26 = smov %s1955_s27 }
 0x69f   : > { %s2453_s27 = smov %s2119_s17  ;;  %s2454_s28 = smov %s1963_s29 }
 0x6a3   : > { %p23_p11 = scmp.ge.s32.totalorder %s2449_s30, 6  }
 0x6a4   : > { %s2455_s29 = smov %s2450_s3 }
 0x6a5   :  { %25 = sbr.rel (!%p23_p11) target bundleno = 11 (0xb), region = 167 }
 0x6aa   :  { %1571 = vsyncpa [#allocation9], 1 }
 0x6ab   :  { %1573 = vsyncpa [#allocation9 + $0x1], 1 }

</bundles_post_ra>
